<compile_context>
chip_gen: v7x
topology: tpu7x:2x2x1
jax: 0.10.0
libtpu: 0.0.40
codegen_flags: <defaults>
</compile_context>

<pallas_src>
import functools

import jax
import jax.numpy as jnp
from jax import lax
from jax.experimental import pallas as pl
from jax.experimental.pallas import tpu as pltpu


ACT_DTYPE = jnp.bfloat16                 # inter-stage activation storage dtype
_VMEM_LIMIT = 32 * 1024 * 1024           # explicit, with headroom for v7x (64 MiB)
_MAX_TILE_R = 2048                       # lane tile for the R = B*Ho*Wo grid axis

_TILED_PARAMS = pltpu.CompilerParams(
    dimension_semantics=("parallel",), vmem_limit_bytes=_VMEM_LIMIT)
_SINGLE_PARAMS = pltpu.CompilerParams(
    dimension_semantics=("arbitrary",), vmem_limit_bytes=_VMEM_LIMIT)


def _full_spec(shape):
    n = len(shape)
    return pl.BlockSpec(shape, lambda i, _n=n: (0,) * _n)


def _pick_tile(r, max_tile=_MAX_TILE_R):
    # Full block when it fits; otherwise a 128-multiple lane tile (ragged tail
    # handled by Pallas masking).  Bounds the VMEM working set for v7x.
    return r if r <= max_tile else max_tile


# ----------------------------------------------------------------------------
# Pallas kernels
# ----------------------------------------------------------------------------
def _mm_bias_act_kernel(p_ref, w_ref, b_ref, o_ref, *, act):
    # out = act(W @ patches + b);  W:(rows, K) bf16, patches:(K, TILE_R) bf16.
    acc = jnp.dot(w_ref[...], p_ref[...], preferred_element_type=jnp.float32)
    acc = acc + b_ref[...]
    if act == "leaky_relu":
        acc = jnp.where(acc > 0, acc, 0.01 * acc)
    elif act == "relu":
        acc = jnp.maximum(acc, 0.0)
    o_ref[...] = acc.astype(o_ref.dtype)


def _mm2_bias_act_kernel(pd_ref, pe_ref, wd_ref, we_ref, b_ref, o_ref, *, act):
    # Skip-fused deconv: the U-Net channel concat is realized as two
    # accumulating matmuls (weight split along Cin), never materialized.
    acc = jnp.dot(wd_ref[...], pd_ref[...], preferred_element_type=jnp.float32)
    acc = acc + jnp.dot(we_ref[...], pe_ref[...],
                        preferred_element_type=jnp.float32)
    acc = acc + b_ref[...]
    if act == "leaky_relu":
        acc = jnp.where(acc > 0, acc, 0.01 * acc)
    o_ref[...] = acc.astype(o_ref.dtype)


def _mm2_mask_kernel(pd_ref, pe_ref, wd_ref, we_ref, b_ref, a_ref, o_ref):
    # Final skip-fused deconv (mask prediction) + magnitude-bounded complex
    # mask apply.  Rows: [real x 4 phases, imag x 4 phases].
    m = jnp.dot(wd_ref[...], pd_ref[...], preferred_element_type=jnp.float32)
    m = m + jnp.dot(we_ref[...], pe_ref[...], preferred_element_type=jnp.float32)
    m = m + b_ref[...]
    mr = m[0:4, :]
    mi = m[4:8, :]
    ar = a_ref[0:4, :]
    ai = a_ref[4:8, :]
    # bounded mask: tanh(|M|) * M/|M|, computed with rsqrt for robustness.
    mag2 = mr * mr + mi * mi
    scale = jnp.tanh(jnp.sqrt(mag2)) * lax.rsqrt(mag2 + 1e-12)
    mr = mr * scale
    mi = mi * scale
    # one unmasked (8, TILE_R) store (no single-row partial stores).
    out = jnp.concatenate([mr * ar - mi * ai, mr * ai + mi * ar], axis=0)
    o_ref[...] = out.astype(o_ref.dtype)


def _bottleneck_kernel(seq_ref, vid_ref, bias_ref,
                       w1_ref, b1_ref, w2_ref, b2_ref,
                       wq_ref, bq_ref, wk_ref, bk_ref,
                       wv_ref, bv_ref, wo_ref, bo_ref,
                       o_ref, *, scale):
    # Fused: video-encoder MLP -> k/v source; q from audio bottleneck; one
    # softmax cross-attention over the folded (batch*seq) rows with a
    # block-diagonal additive bias; output projection; residual add.
    f32, bf16 = jnp.float32, jnp.bfloat16
    seq = seq_ref[...]                                               # (B*Tq, C) bf16

    h = jnp.dot(vid_ref[...], w1_ref[...], preferred_element_type=f32) + b1_ref[...]
    h = jnp.maximum(h, 0.0)
    ctx = jnp.dot(h.astype(bf16), w2_ref[...],
                  preferred_element_type=f32) + b2_ref[...]          # (B*Tk, E)
    ctx = ctx.astype(bf16)

    q = jnp.dot(seq, wq_ref[...], preferred_element_type=f32) + bq_ref[...]
    k = jnp.dot(ctx, wk_ref[...], preferred_element_type=f32) + bk_ref[...]
    v = jnp.dot(ctx, wv_ref[...], preferred_element_type=f32) + bv_ref[...]

    # q @ k^T without an explicit transpose (NT dot_general).
    s = lax.dot_general(q.astype(bf16), k.astype(bf16),
                        (((1,), (1,)), ((), ())),
                        preferred_element_type=f32) * scale
    s = s + bias_ref[...]                     # block-diagonal (-1e30 off-batch)
    m = jnp.max(s, axis=-1, keepdims=True)
    p = jnp.exp(s - m)
    l = jnp.sum(p, axis=-1, keepdims=True)
    att = jnp.dot(p.astype(bf16), v.astype(bf16), preferred_element_type=f32)
    att = att * pl.reciprocal(l, approx=True)
    out = jnp.dot(att.astype(bf16), wo_ref[...],
                  preferred_element_type=f32) + bo_ref[...]
    o_ref[...] = (seq.astype(f32) + out).astype(o_ref.dtype)


# ----------------------------------------------------------------------------
# Pallas wrappers (lane-tiled grids over R = B*Ho*Wo)
# ----------------------------------------------------------------------------
def _matmul_bias_act(patches, wm, bm, act, out_dtype=ACT_DTYPE):
    K, R = patches.shape
    rows = wm.shape[0]
    tile = _pick_tile(R)
    return pl.pallas_call(
        functools.partial(_mm_bias_act_kernel, act=act),
        out_shape=jax.ShapeDtypeStruct((rows, R), out_dtype),
        grid=(pl.cdiv(R, tile),),
        in_specs=[pl.BlockSpec((K, tile), lambda i: (0, i)),
                  pl.BlockSpec((rows, K), lambda i: (0, 0)),
                  pl.BlockSpec((rows, 1), lambda i: (0, 0))],
        out_specs=pl.BlockSpec((rows, tile), lambda i: (0, i)),
        compiler_params=_TILED_PARAMS,
    )(patches, wm, bm)


def _matmul2_bias_act(pd, pe, wd, we, bm, act, out_dtype=ACT_DTYPE,
                      extra=None, kernel=None):
    K1, R = pd.shape
    K2 = pe.shape[0]
    rows = wd.shape[0]
    tile = _pick_tile(R)
    in_specs = [pl.BlockSpec((K1, tile), lambda i: (0, i)),
                pl.BlockSpec((K2, tile), lambda i: (0, i)),
                pl.BlockSpec((rows, K1), lambda i: (0, 0)),
                pl.BlockSpec((rows, K2), lambda i: (0, 0)),
                pl.BlockSpec((rows, 1), lambda i: (0, 0))]
    ins = [pd, pe, wd, we, bm]
    if extra is not None:
        in_specs.append(pl.BlockSpec((extra.shape[0], tile), lambda i: (0, i)))
        ins.append(extra)
    if kernel is None:
        kernel = functools.partial(_mm2_bias_act_kernel, act=act)
    return pl.pallas_call(
        kernel,
        out_shape=jax.ShapeDtypeStruct((rows, R), out_dtype),
        grid=(pl.cdiv(R, tile),),
        in_specs=in_specs,
        out_specs=pl.BlockSpec((rows, tile), lambda i: (0, i)),
        compiler_params=_TILED_PARAMS,
    )(*ins)


def bottleneck_attention(p, seq2, vid2, attn_bias):
    d = p["q_proj"][0].shape[1]
    scale = 1.0 / float(d) ** 0.5
    ins = [seq2, vid2, attn_bias,
           p["ve_fc1"][0], p["ve_fc1"][1], p["ve_fc2"][0], p["ve_fc2"][1],
           p["q_proj"][0], p["q_proj"][1], p["k_proj"][0], p["k_proj"][1],
           p["v_proj"][0], p["v_proj"][1], p["o_proj"][0], p["o_proj"][1]]
    return pl.pallas_call(
        functools.partial(_bottleneck_kernel, scale=scale),
        out_shape=jax.ShapeDtypeStruct(seq2.shape, ACT_DTYPE),
        grid=(1,),
        in_specs=[_full_spec(a.shape) for a in ins],
        out_specs=_full_spec(seq2.shape),
        compiler_params=_SINGLE_PARAMS,
    )(*ins)


# ----------------------------------------------------------------------------
# Layout glue (XLA side).  Activations live in (C, B, H, W) end-to-end.
# ----------------------------------------------------------------------------
def _im2col_cbhw(x, kh, kw, stride, pad):
    # (Cin, B, H, W) -> (Cin*kh*kw, B*Ho*Wo); lanes = batch*spatial.
    # TODO(synk): move in-kernel at production sizes (stride-2 inflation 2.25x).
    if pad:
        x = jnp.pad(x, ((0, 0), (0, 0), (pad, pad), (pad, pad)))
    Cin, B, H, W = x.shape
    Ho = (H - kh) // stride + 1
    Wo = (W - kw) // stride + 1
    cols = []
    for i in range(kh):
        for j in range(kw):
            cols.append(x[:, :, i:i + stride * Ho:stride, j:j + stride * Wo:stride])
    patches = jnp.stack(cols, axis=1)                   # (Cin, kh*kw, B, Ho, Wo)
    return patches.reshape(Cin * kh * kw, B * Ho * Wo), B, Ho, Wo


def conv2d_cbhw(x, params, stride, pad, act, kh=3, kw=3):
    wm, bm = params                                     # (Cout, Cin*kh*kw) bf16
    Cout = wm.shape[0]
    patches, B, Ho, Wo = _im2col_cbhw(x, kh, kw, stride, pad)
    out = _matmul_bias_act(patches.astype(jnp.bfloat16), wm, bm, act)
    return out.reshape(Cout, B, Ho, Wo)


def _deconv_taps(x):
    # Sub-pixel deconv taps: 2x2 forward neighborhood (zero-padded past the
    # bottom/right edge, matching ConvTranspose2d(k=3,s=2,p=1,op=1) bounds).
    Cin, B, H, W = x.shape
    xp = jnp.pad(x, ((0, 0), (0, 0), (0, 1), (0, 1)))
    taps = jnp.stack([xp[:, :, :H, :W], xp[:, :, :H, 1:W + 1],
                      xp[:, :, 1:H + 1, :W], xp[:, :, 1:H + 1, 1:W + 1]], axis=1)
    return taps.reshape(Cin * 4, B * H * W)


def _interleave_phases(y, cout, B, H, W):
    # (Cout*4, B*H*W) rows ordered (cout, phase=(a,b)) -> (Cout, B, 2H, 2W).
    y = y.reshape(cout, 2, 2, B, H, W).transpose(0, 3, 4, 1, 5, 2)
    return y.reshape(cout, B, 2 * H, 2 * W)


def _phase_split(x):
    # Inverse of _interleave_phases: (C, B, 2H, 2W) -> (C*4, B*H*W).
    C, B, H2, W2 = x.shape
    H, W = H2 // 2, W2 // 2
    xr = x.reshape(C, B, H, 2, W, 2).transpose(0, 3, 5, 1, 2, 4)
    return xr.reshape(C * 4, B * H * W)


def deconv2x(x, params, act):
    wm, bm = params
    _, B, H, W = x.shape
    cout = wm.shape[0] // 4
    taps = _deconv_taps(x).astype(jnp.bfloat16)
    y = _matmul_bias_act(taps, wm, bm, act)
    return _interleave_phases(y, cout, B, H, W)


def deconv2x_skip(x, skip, params, act):
    wd, we, bm = params
    _, B, H, W = x.shape
    cout = wd.shape[0] // 4
    pd = _deconv_taps(x).astype(jnp.bfloat16)
    pe = _deconv_taps(skip).astype(jnp.bfloat16)
    y = _matmul2_bias_act(pd, pe, wd, we, bm, act)
    return _interleave_phases(y, cout, B, H, W)


def deconv2x_skip_mask(x, skip, params, audio_cbft):
    # Final ConvTranspose2d fused with the bounded complex-mask apply.
    wd, we, bm = params
    _, B, H, W = x.shape
    cout = wd.shape[0] // 4                     # == 2 (real, imag)
    pd = _deconv_taps(x).astype(jnp.bfloat16)
    pe = _deconv_taps(skip).astype(jnp.bfloat16)
    aph = _phase_split(audio_cbft)              # (8, B*H*W) f32, same phase order
    y = _matmul2_bias_act(pd, pe, wd, we, bm, act="none",
                          out_dtype=jnp.float32, extra=aph,
                          kernel=_mm2_mask_kernel)
    enh = _interleave_phases(y, cout, B, H, W)  # (2, B, 2H, 2W)
    return enh.transpose(1, 0, 2, 3)            # (B, 2, F, T)


# ----------------------------------------------------------------------------
# Parameters (deterministic, synthetic) + one-time kernel-ready prep
# ----------------------------------------------------------------------------
def init_params(key, av_embedding=32, video_feat=3 * 8 * 8):
    ks = jax.random.split(key, 16)

    def lin(k, fin, fout):
        w = jax.random.normal(k, (fin, fout), jnp.float32) / jnp.sqrt(fin)
        return w, jnp.zeros((1, fout), jnp.float32)

    def conv(k, cout, cin, kh, kw):
        w = (jax.random.normal(k, (cout, cin, kh, kw), jnp.float32)
             / jnp.sqrt(cin * kh * kw))
        return w, jnp.zeros((cout, 1), jnp.float32)

    def convT(k, cin, cout, kh, kw):
        w = (jax.random.normal(k, (cin, cout, kh, kw), jnp.float32)
             / jnp.sqrt(cin * kh * kw))
        return w, jnp.zeros((cout, 1), jnp.float32)

    E = av_embedding
    return {
        "ve_fc1": lin(ks[0], video_feat, E),
        "ve_fc2": lin(ks[1], E, E),
        "enc1": conv(ks[2], 8, 2, 3, 3),
        "enc2": conv(ks[3], 16, 8, 3, 3),
        "enc3": conv(ks[4], 32, 16, 3, 3),
        "q_proj": lin(ks[5], 32, 32),
        "k_proj": lin(ks[6], E, 32),
        "v_proj": lin(ks[7], E, 32),
        "o_proj": lin(ks[8], 32, 32),
        "dec1": convT(ks[9], 32, 16, 3, 3),
        "dec2": convT(ks[10], 32, 8, 3, 3),
        "dec3": convT(ks[11], 16, 2, 3, 3),
    }


def _prep_deconv_weight(w_t, b):
    # PyTorch ConvTranspose2d weight (Cin, Cout, 3, 3), stride 2, pad 1, out_pad 1
    # -> sub-pixel phase-decomposed matrix (Cout*4_phases, Cin*4_taps).
    # tap order (dy,dx): (0,0),(0,1),(1,0),(1,1); phase order (a,b) of output.
    Cin, Cout = w_t.shape[0], w_t.shape[1]
    w = jnp.transpose(w_t, (1, 0, 2, 3))                 # (Cout, Cin, 3, 3)
    z = jnp.zeros((Cout, Cin), w.dtype)
    phase_rows = [
        [w[:, :, 1, 1], z,             z,             z],               # (2m,   2n)
        [w[:, :, 1, 2], w[:, :, 1, 0], z,             z],               # (2m,   2n+1)
        [w[:, :, 2, 1], z,             w[:, :, 0, 1], z],               # (2m+1, 2n)
        [w[:, :, 2, 2], w[:, :, 2, 0], w[:, :, 0, 2], w[:, :, 0, 0]],   # (2m+1, 2n+1)
    ]
    wm = jnp.stack([jnp.stack(r, axis=-1) for r in phase_rows], axis=1)
    wm = wm.reshape(Cout * 4, Cin * 4)                    # rows (co, ph), cols (ci, tap)
    bm = jnp.repeat(b, 4, axis=0)                         # (Cout*4, 1)
    return wm, bm


def prepare_params(p):
    # One-time weight packing (review item: no per-forward flip/transpose/reshape).
    bf16 = jnp.bfloat16

    def conv_mat(w, b):
        cout, cin, kh, kw = w.shape
        return w.reshape(cout, cin * kh * kw).astype(bf16), b

    def deconv_mat(w_t, b, split=None):
        wm, bm = _prep_deconv_weight(w_t, b)
        wm = wm.astype(bf16)
        if split is None:
            return wm, bm
        # split along Cin: first `split` input channels come from the decoder
        # path, the rest from the U-Net skip (original concat order [d, e]).
        return wm[:, :split * 4], wm[:, split * 4:], bm

    q = {}
    q["enc1"] = conv_mat(*p["enc1"])
    q["enc2"] = conv_mat(*p["enc2"])
    q["enc3"] = conv_mat(*p["enc3"])
    for k in ("ve_fc1", "ve_fc2", "q_proj", "k_proj", "v_proj", "o_proj"):
        w, b = p[k]
        q[k] = (w.astype(bf16), b)
    q["dec1"] = deconv_mat(*p["dec1"])
    q["dec2"] = deconv_mat(*p["dec2"], split=16)
    q["dec3"] = deconv_mat(*p["dec3"], split=8)
    return q


# ----------------------------------------------------------------------------
# Forward pass
# ----------------------------------------------------------------------------
def dcunet10_cross_attention(p, audio, video):
    # audio: (B, 2, F, T) real/imag spectrogram;  video: (B, Tv, C, H, W)
    B, _, F_, T_ = audio.shape
    Tv = video.shape[1]
    x = audio.transpose(1, 0, 2, 3)                                   # (2, B, F, T) f32

    # ---- encoder: one lane-tiled matmul kernel per stage (bf16 MXU, f32 acc)
    e1 = conv2d_cbhw(x,  p["enc1"], stride=2, pad=1, act="leaky_relu")  # (8,  B, F/2, T/2)
    e2 = conv2d_cbhw(e1, p["enc2"], stride=2, pad=1, act="leaky_relu")  # (16, B, F/4, T/4)
    e3 = conv2d_cbhw(e2, p["enc3"], stride=2, pad=1, act="leaky_relu")  # (32, B, F/8, T/8)

    # ---- fused bottleneck: video-encoder MLP + q/k/v/o + attention + residual
    Cb, _, Fb, Tb = e3.shape
    tq, tk = Fb * Tb, Tv
    # rows are laid out batch-contiguous; the block-diagonal bias below makes
    # that assumption explicit.
    seq2 = e3.transpose(1, 2, 3, 0).reshape(B * tq, Cb)
    vid2 = video.reshape(B * Tv, -1).astype(jnp.bfloat16)
    attn_bias = jnp.where(
        (jnp.arange(B * tq)[:, None] // tq) == (jnp.arange(B * tk)[None, :] // tk),
        0.0, -1e30).astype(jnp.float32)
    bott2 = bottleneck_attention(p, seq2, vid2, attn_bias)            # (B*tq, Cb)
    bott = bott2.reshape(B, Fb, Tb, Cb).transpose(3, 0, 1, 2)         # (Cb, B, Fb, Tb)

    # ---- decoder: sub-pixel deconvs, skip concats fused into the kernels
    d1 = deconv2x(bott, p["dec1"], act="leaky_relu")                  # (16, B, F/4, T/4)
    d2 = deconv2x_skip(d1, e2, p["dec2"], act="leaky_relu")           # (8,  B, F/2, T/2)

    # ---- final deconv fused with the bounded complex-mask apply
    return deconv2x_skip_mask(d2, e1, p["dec3"], x)                   # (B, 2, F, T) f32


# ----------------------------------------------------------------------------
if __name__ == "__main__":
    key = jax.random.PRNGKey(0)
    k_p, k_a, k_v = jax.random.split(key, 3)

    params = prepare_params(init_params(k_p, av_embedding=32))

    # small shapes consistent with the module:
    #   audio: complex spectrogram as (B, 2, F, T); video: (B, Tv, C, H, W)
    audio = jax.random.normal(k_a, (2, 2, 16, 16), jnp.float32)
    video = jax.random.normal(k_v, (2, 8, 3, 8, 8), jnp.float32)

    fwd = jax.jit(dcunet10_cross_attention)
    out = jax.block_until_ready(fwd(params, audio, video))
    assert out.shape == audio.shape and out.dtype == jnp.float32
    print("KERNEL_OK")
</pallas_src>

<mosaic_0001>
module attributes {stable_mosaic.version = 11 : i64} {
  func.func @_mm_bias_act_kernel(%arg0: i32, %arg1: memref<18x128xbf16, #tpu.memory_space<vmem>>, %arg2: memref<8x18xbf16, #tpu.memory_space<vmem>>, %arg3: memref<8x1xf32, #tpu.memory_space<vmem>>, %arg4: memref<8x128xbf16, #tpu.memory_space<vmem>>) attributes {dimension_semantics = [#tpu.dimension_semantics<parallel>], iteration_bounds = array<i64: 1>, scalar_prefetch = 0 : i64, scratch_operands = 0 : i64, tpu.core_type = #tpu.core_type<tc>, window_params = [{transform_indices = @transform_0, window_bounds = array<i64: 18, 128>}, {pipeline_mode = #tpu.pipeline_mode<synchronous>, transform_indices = @transform_1, window_bounds = array<i64: 8, 18>}, {pipeline_mode = #tpu.pipeline_mode<synchronous>, transform_indices = @transform_2, window_bounds = array<i64: 8, 1>}, {transform_indices = @transform_3, window_bounds = array<i64: 8, 128>}]} {
    %c0 = arith.constant 0 : index
    %c0_0 = arith.constant 0 : index
    %0 = vector.load %arg2[%c0, %c0_0] : memref<8x18xbf16, #tpu.memory_space<vmem>>, vector<8x18xbf16>
    %c0_1 = arith.constant 0 : index
    %c0_2 = arith.constant 0 : index
    %1 = vector.load %arg1[%c0_1, %c0_2] : memref<18x128xbf16, #tpu.memory_space<vmem>>, vector<18x128xbf16>
    %cst = arith.constant dense<0.000000e+00> : vector<8x128xf32>
    %2 = tpu.matmul %0, %1, %cst {dimension_numbers = #tpu.dot_dimension_numbers<[1], [0], [0], [1], [0, 0, 1, 1], [], []>} : vector<8x18xbf16>, vector<18x128xbf16>, vector<8x128xf32> -> vector<8x128xf32>
    %c0_3 = arith.constant 0 : index
    %c0_4 = arith.constant 0 : index
    %3 = vector.load %arg3[%c0_3, %c0_4] : memref<8x1xf32, #tpu.memory_space<vmem>>, vector<8x1xf32>
    %4 = vector.broadcast %3 : vector<8x1xf32> to vector<8x128xf32>
    %5 = arith.addf %2, %4 : vector<8x128xf32>
    %cst_5 = arith.constant 0.000000e+00 : f32
    %6 = vector.broadcast %cst_5 : f32 to vector<8x128xf32>
    %7 = arith.cmpf ogt, %5, %6 : vector<8x128xf32>
    %cst_6 = arith.constant 0.00999999977 : f32
    %8 = vector.broadcast %cst_6 : f32 to vector<8x128xf32>
    %9 = arith.mulf %8, %5 : vector<8x128xf32>
    %10 = arith.select %7, %5, %9 : vector<8x128xi1>, vector<8x128xf32>
    %11 = arith.truncf %10 : vector<8x128xf32> to vector<8x128xbf16>
    %c0_7 = arith.constant 0 : index
    %c0_8 = arith.constant 0 : index
    %12 = vector.load %arg4[%c0_7, %c0_8] : memref<8x128xbf16, #tpu.memory_space<vmem>>, vector<8x128xbf16>
    tpu.vector_store %arg4[%c0_7, %c0_8], %11 {strides = array<i32>} : memref<8x128xbf16, #tpu.memory_space<vmem>>, vector<8x128xbf16>,
    return
  }
  func.func @transform_0(%arg0: i32) -> (i32, i32) {
    %c0_i32 = arith.constant 0 : i32
    %c0_i32_0 = arith.constant 0 : i32
    return %c0_i32, %arg0 : i32, i32
  }
  func.func @transform_1(%arg0: i32) -> (i32, i32) {
    %c0_i32 = arith.constant 0 : i32
    %c0_i32_0 = arith.constant 0 : i32
    %c0_i32_1 = arith.constant 0 : i32
    return %c0_i32, %c0_i32_0 : i32, i32
  }
  func.func @transform_2(%arg0: i32) -> (i32, i32) {
    %c0_i32 = arith.constant 0 : i32
    %c0_i32_0 = arith.constant 0 : i32
    %c0_i32_1 = arith.constant 0 : i32
    return %c0_i32, %c0_i32_0 : i32, i32
  }
  func.func @transform_3(%arg0: i32) -> (i32, i32) {
    %c0_i32 = arith.constant 0 : i32
    %c0_i32_0 = arith.constant 0 : i32
    return %c0_i32, %arg0 : i32, i32
  }
}

module attributes {stable_mosaic.version = 11 : i64} {
  func.func @_mm_bias_act_kernel(%arg0: i32, %arg1: memref<72x32xbf16, #tpu.memory_space<vmem>>, %arg2: memref<16x72xbf16, #tpu.memory_space<vmem>>, %arg3: memref<16x1xf32, #tpu.memory_space<vmem>>, %arg4: memref<16x32xbf16, #tpu.memory_space<vmem>>) attributes {dimension_semantics = [#tpu.dimension_semantics<parallel>], iteration_bounds = array<i64: 1>, scalar_prefetch = 0 : i64, scratch_operands = 0 : i64, tpu.core_type = #tpu.core_type<tc>, window_params = [{transform_indices = @transform_0, window_bounds = array<i64: 72, 32>}, {pipeline_mode = #tpu.pipeline_mode<synchronous>, transform_indices = @transform_1, window_bounds = array<i64: 16, 72>}, {pipeline_mode = #tpu.pipeline_mode<synchronous>, transform_indices = @transform_2, window_bounds = array<i64: 16, 1>}, {transform_indices = @transform_3, window_bounds = array<i64: 16, 32>}]} {
    %c0 = arith.constant 0 : index
    %c0_0 = arith.constant 0 : index
    %0 = vector.load %arg2[%c0, %c0_0] : memref<16x72xbf16, #tpu.memory_space<vmem>>, vector<16x72xbf16>
    %c0_1 = arith.constant 0 : index
    %c0_2 = arith.constant 0 : index
    %1 = vector.load %arg1[%c0_1, %c0_2] : memref<72x32xbf16, #tpu.memory_space<vmem>>, vector<72x32xbf16>
    %cst = arith.constant dense<0.000000e+00> : vector<16x32xf32>
    %2 = tpu.matmul %0, %1, %cst {dimension_numbers = #tpu.dot_dimension_numbers<[1], [0], [0], [1], [0, 0, 1, 1], [], []>} : vector<16x72xbf16>, vector<72x32xbf16>, vector<16x32xf32> -> vector<16x32xf32>
    %c0_3 = arith.constant 0 : index
    %c0_4 = arith.constant 0 : index
    %3 = vector.load %arg3[%c0_3, %c0_4] : memref<16x1xf32, #tpu.memory_space<vmem>>, vector<16x1xf32>
    %4 = vector.broadcast %3 : vector<16x1xf32> to vector<16x32xf32>
    %5 = arith.addf %2, %4 : vector<16x32xf32>
    %cst_5 = arith.constant 0.000000e+00 : f32
    %6 = vector.broadcast %cst_5 : f32 to vector<16x32xf32>
    %7 = arith.cmpf ogt, %5, %6 : vector<16x32xf32>
    %cst_6 = arith.constant 0.00999999977 : f32
    %8 = vector.broadcast %cst_6 : f32 to vector<16x32xf32>
    %9 = arith.mulf %8, %5 : vector<16x32xf32>
    %10 = arith.select %7, %5, %9 : vector<16x32xi1>, vector<16x32xf32>
    %11 = arith.truncf %10 : vector<16x32xf32> to vector<16x32xbf16>
    %c0_7 = arith.constant 0 : index
    %c0_8 = arith.constant 0 : index
    %12 = vector.load %arg4[%c0_7, %c0_8] : memref<16x32xbf16, #tpu.memory_space<vmem>>, vector<16x32xbf16>
    tpu.vector_store %arg4[%c0_7, %c0_8], %11 {strides = array<i32>} : memref<16x32xbf16, #tpu.memory_space<vmem>>, vector<16x32xbf16>,
    return
  }
  func.func @transform_0(%arg0: i32) -> (i32, i32) {
    %c0_i32 = arith.constant 0 : i32
    %c0_i32_0 = arith.constant 0 : i32
    return %c0_i32, %arg0 : i32, i32
  }
  func.func @transform_1(%arg0: i32) -> (i32, i32) {
    %c0_i32 = arith.constant 0 : i32
    %c0_i32_0 = arith.constant 0 : i32
    %c0_i32_1 = arith.constant 0 : i32
    return %c0_i32, %c0_i32_0 : i32, i32
  }
  func.func @transform_2(%arg0: i32) -> (i32, i32) {
    %c0_i32 = arith.constant 0 : i32
    %c0_i32_0 = arith.constant 0 : i32
    %c0_i32_1 = arith.constant 0 : i32
    return %c0_i32, %c0_i32_0 : i32, i32
  }
  func.func @transform_3(%arg0: i32) -> (i32, i32) {
    %c0_i32 = arith.constant 0 : i32
    %c0_i32_0 = arith.constant 0 : i32
    return %c0_i32, %arg0 : i32, i32
  }
}

module attributes {stable_mosaic.version = 11 : i64} {
  func.func @_mm_bias_act_kernel(%arg0: i32, %arg1: memref<144x8xbf16, #tpu.memory_space<vmem>>, %arg2: memref<32x144xbf16, #tpu.memory_space<vmem>>, %arg3: memref<32x1xf32, #tpu.memory_space<vmem>>, %arg4: memref<32x8xbf16, #tpu.memory_space<vmem>>) attributes {dimension_semantics = [#tpu.dimension_semantics<parallel>], iteration_bounds = array<i64: 1>, scalar_prefetch = 0 : i64, scratch_operands = 0 : i64, tpu.core_type = #tpu.core_type<tc>, window_params = [{transform_indices = @transform_0, window_bounds = array<i64: 144, 8>}, {pipeline_mode = #tpu.pipeline_mode<synchronous>, transform_indices = @transform_1, window_bounds = array<i64: 32, 144>}, {pipeline_mode = #tpu.pipeline_mode<synchronous>, transform_indices = @transform_2, window_bounds = array<i64: 32, 1>}, {transform_indices = @transform_3, window_bounds = array<i64: 32, 8>}]} {
    %c0 = arith.constant 0 : index
    %c0_0 = arith.constant 0 : index
    %0 = vector.load %arg2[%c0, %c0_0] : memref<32x144xbf16, #tpu.memory_space<vmem>>, vector<32x144xbf16>
    %c0_1 = arith.constant 0 : index
    %c0_2 = arith.constant 0 : index
    %1 = vector.load %arg1[%c0_1, %c0_2] : memref<144x8xbf16, #tpu.memory_space<vmem>>, vector<144x8xbf16>
    %cst = arith.constant dense<0.000000e+00> : vector<32x8xf32>
    %2 = tpu.matmul %0, %1, %cst {dimension_numbers = #tpu.dot_dimension_numbers<[1], [0], [0], [1], [0, 0, 1, 1], [], []>} : vector<32x144xbf16>, vector<144x8xbf16>, vector<32x8xf32> -> vector<32x8xf32>
    %c0_3 = arith.constant 0 : index
    %c0_4 = arith.constant 0 : index
    %3 = vector.load %arg3[%c0_3, %c0_4] : memref<32x1xf32, #tpu.memory_space<vmem>>, vector<32x1xf32>
    %4 = vector.broadcast %3 : vector<32x1xf32> to vector<32x8xf32>
    %5 = arith.addf %2, %4 : vector<32x8xf32>
    %cst_5 = arith.constant 0.000000e+00 : f32
    %6 = vector.broadcast %cst_5 : f32 to vector<32x8xf32>
    %7 = arith.cmpf ogt, %5, %6 : vector<32x8xf32>
    %cst_6 = arith.constant 0.00999999977 : f32
    %8 = vector.broadcast %cst_6 : f32 to vector<32x8xf32>
    %9 = arith.mulf %8, %5 : vector<32x8xf32>
    %10 = arith.select %7, %5, %9 : vector<32x8xi1>, vector<32x8xf32>
    %11 = arith.truncf %10 : vector<32x8xf32> to vector<32x8xbf16>
    %c0_7 = arith.constant 0 : index
    %c0_8 = arith.constant 0 : index
    %12 = vector.load %arg4[%c0_7, %c0_8] : memref<32x8xbf16, #tpu.memory_space<vmem>>, vector<32x8xbf16>
    tpu.vector_store %arg4[%c0_7, %c0_8], %11 {strides = array<i32>} : memref<32x8xbf16, #tpu.memory_space<vmem>>, vector<32x8xbf16>,
    return
  }
  func.func @transform_0(%arg0: i32) -> (i32, i32) {
    %c0_i32 = arith.constant 0 : i32
    %c0_i32_0 = arith.constant 0 : i32
    return %c0_i32, %arg0 : i32, i32
  }
  func.func @transform_1(%arg0: i32) -> (i32, i32) {
    %c0_i32 = arith.constant 0 : i32
    %c0_i32_0 = arith.constant 0 : i32
    %c0_i32_1 = arith.constant 0 : i32
    return %c0_i32, %c0_i32_0 : i32, i32
  }
  func.func @transform_2(%arg0: i32) -> (i32, i32) {
    %c0_i32 = arith.constant 0 : i32
    %c0_i32_0 = arith.constant 0 : i32
    %c0_i32_1 = arith.constant 0 : i32
    return %c0_i32, %c0_i32_0 : i32, i32
  }
  func.func @transform_3(%arg0: i32) -> (i32, i32) {
    %c0_i32 = arith.constant 0 : i32
    %c0_i32_0 = arith.constant 0 : i32
    return %c0_i32, %arg0 : i32, i32
  }
}

module attributes {stable_mosaic.version = 11 : i64} {
  func.func @_bottleneck_kernel(%arg0: i32, %arg1: memref<8x32xbf16, #tpu.memory_space<vmem>>, %arg2: memref<16x192xbf16, #tpu.memory_space<vmem>>, %arg3: memref<8x16xf32, #tpu.memory_space<vmem>>, %arg4: memref<192x32xbf16, #tpu.memory_space<vmem>>, %arg5: memref<1x32xf32, #tpu.memory_space<vmem>>, %arg6: memref<32x32xbf16, #tpu.memory_space<vmem>>, %arg7: memref<1x32xf32, #tpu.memory_space<vmem>>, %arg8: memref<32x32xbf16, #tpu.memory_space<vmem>>, %arg9: memref<1x32xf32, #tpu.memory_space<vmem>>, %arg10: memref<32x32xbf16, #tpu.memory_space<vmem>>, %arg11: memref<1x32xf32, #tpu.memory_space<vmem>>, %arg12: memref<32x32xbf16, #tpu.memory_space<vmem>>, %arg13: memref<1x32xf32, #tpu.memory_space<vmem>>, %arg14: memref<32x32xbf16, #tpu.memory_space<vmem>>, %arg15: memref<1x32xf32, #tpu.memory_space<vmem>>, %arg16: memref<8x32xbf16, #tpu.memory_space<vmem>>) attributes {dimension_semantics = [#tpu.dimension_semantics<arbitrary>], iteration_bounds = array<i64: 1>, scalar_prefetch = 0 : i64, scratch_operands = 0 : i64, tpu.core_type = #tpu.core_type<tc>, window_params = [{pipeline_mode = #tpu.pipeline_mode<synchronous>, transform_indices = @transform_0, window_bounds = array<i64: 8, 32>}, {pipeline_mode = #tpu.pipeline_mode<synchronous>, transform_indices = @transform_1, window_bounds = array<i64: 16, 192>}, {pipeline_mode = #tpu.pipeline_mode<synchronous>, transform_indices = @transform_2, window_bounds = array<i64: 8, 16>}, {pipeline_mode = #tpu.pipeline_mode<synchronous>, transform_indices = @transform_3, window_bounds = array<i64: 192, 32>}, {pipeline_mode = #tpu.pipeline_mode<synchronous>, transform_indices = @transform_4, window_bounds = array<i64: 1, 32>}, {pipeline_mode = #tpu.pipeline_mode<synchronous>, transform_indices = @transform_5, window_bounds = array<i64: 32, 32>}, {pipeline_mode = #tpu.pipeline_mode<synchronous>, transform_indices = @transform_6, window_bounds = array<i64: 1, 32>}, {pipeline_mode = #tpu.pipeline_mode<synchronous>, transform_indices = @transform_7, window_bounds = array<i64: 32, 32>}, {pipeline_mode = #tpu.pipeline_mode<synchronous>, transform_indices = @transform_8, window_bounds = array<i64: 1, 32>}, {pipeline_mode = #tpu.pipeline_mode<synchronous>, transform_indices = @transform_9, window_bounds = array<i64: 32, 32>}, {pipeline_mode = #tpu.pipeline_mode<synchronous>, transform_indices = @transform_10, window_bounds = array<i64: 1, 32>}, {pipeline_mode = #tpu.pipeline_mode<synchronous>, transform_indices = @transform_11, window_bounds = array<i64: 32, 32>}, {pipeline_mode = #tpu.pipeline_mode<synchronous>, transform_indices = @transform_12, window_bounds = array<i64: 1, 32>}, {pipeline_mode = #tpu.pipeline_mode<synchronous>, transform_indices = @transform_13, window_bounds = array<i64: 32, 32>}, {pipeline_mode = #tpu.pipeline_mode<synchronous>, transform_indices = @transform_14, window_bounds = array<i64: 1, 32>}, {pipeline_mode = #tpu.pipeline_mode<synchronous>, transform_indices = @transform_15, window_bounds = array<i64: 8, 32>}]} {
    %c0 = arith.constant 0 : index
    %c0_0 = arith.constant 0 : index
    %0 = vector.load %arg1[%c0, %c0_0] : memref<8x32xbf16, #tpu.memory_space<vmem>>, vector<8x32xbf16>
    %c0_1 = arith.constant 0 : index
    %c0_2 = arith.constant 0 : index
    %1 = vector.load %arg2[%c0_1, %c0_2] : memref<16x192xbf16, #tpu.memory_space<vmem>>, vector<16x192xbf16>
    %c0_3 = arith.constant 0 : index
    %c0_4 = arith.constant 0 : index
    %2 = vector.load %arg4[%c0_3, %c0_4] : memref<192x32xbf16, #tpu.memory_space<vmem>>, vector<192x32xbf16>
    %cst = arith.constant dense<0.000000e+00> : vector<16x32xf32>
    %3 = tpu.matmul %1, %2, %cst {dimension_numbers = #tpu.dot_dimension_numbers<[1], [0], [0], [1], [0, 0, 1, 1], [], []>} : vector<16x192xbf16>, vector<192x32xbf16>, vector<16x32xf32> -> vector<16x32xf32>
    %c0_5 = arith.constant 0 : index
    %c0_6 = arith.constant 0 : index
    %4 = vector.load %arg5[%c0_5, %c0_6] : memref<1x32xf32, #tpu.memory_space<vmem>>, vector<1x32xf32>
    %5 = vector.broadcast %4 : vector<1x32xf32> to vector<16x32xf32>
    %6 = arith.addf %3, %5 : vector<16x32xf32>
    %cst_7 = arith.constant 0.000000e+00 : f32
    %7 = vector.broadcast %cst_7 : f32 to vector<16x32xf32>
    %8 = arith.maximumf %6, %7 : vector<16x32xf32>
    %9 = arith.truncf %8 : vector<16x32xf32> to vector<16x32xbf16>
    %c0_8 = arith.constant 0 : index
    %c0_9 = arith.constant 0 : index
    %10 = vector.load %arg6[%c0_8, %c0_9] : memref<32x32xbf16, #tpu.memory_space<vmem>>, vector<32x32xbf16>
    %cst_10 = arith.constant dense<0.000000e+00> : vector<16x32xf32>
    %11 = tpu.matmul %9, %10, %cst_10 {dimension_numbers = #tpu.dot_dimension_numbers<[1], [0], [0], [1], [0, 0, 1, 1], [], []>} : vector<16x32xbf16>, vector<32x32xbf16>, vector<16x32xf32> -> vector<16x32xf32>
    %c0_11 = arith.constant 0 : index
    %c0_12 = arith.constant 0 : index
    %12 = vector.load %arg7[%c0_11, %c0_12] : memref<1x32xf32, #tpu.memory_space<vmem>>, vector<1x32xf32>
    %13 = vector.broadcast %12 : vector<1x32xf32> to vector<16x32xf32>
    %14 = arith.addf %11, %13 : vector<16x32xf32>
    %15 = arith.truncf %14 : vector<16x32xf32> to vector<16x32xbf16>
    %c0_13 = arith.constant 0 : index
    %c0_14 = arith.constant 0 : index
    %16 = vector.load %arg8[%c0_13, %c0_14] : memref<32x32xbf16, #tpu.memory_space<vmem>>, vector<32x32xbf16>
    %cst_15 = arith.constant dense<0.000000e+00> : vector<8x32xf32>
    %17 = tpu.matmul %0, %16, %cst_15 {dimension_numbers = #tpu.dot_dimension_numbers<[1], [0], [0], [1], [0, 0, 1, 1], [], []>} : vector<8x32xbf16>, vector<32x32xbf16>, vector<8x32xf32> -> vector<8x32xf32>
    %c0_16 = arith.constant 0 : index
    %c0_17 = arith.constant 0 : index
    %18 = vector.load %arg9[%c0_16, %c0_17] : memref<1x32xf32, #tpu.memory_space<vmem>>, vector<1x32xf32>
    %19 = vector.broadcast %18 : vector<1x32xf32> to vector<8x32xf32>
    %20 = arith.addf %17, %19 : vector<8x32xf32>
    %c0_18 = arith.constant 0 : index
    %c0_19 = arith.constant 0 : index
    %21 = vector.load %arg10[%c0_18, %c0_19] : memref<32x32xbf16, #tpu.memory_space<vmem>>, vector<32x32xbf16>
    %cst_20 = arith.constant dense<0.000000e+00> : vector<16x32xf32>
    %22 = tpu.matmul %15, %21, %cst_20 {dimension_numbers = #tpu.dot_dimension_numbers<[1], [0], [0], [1], [0, 0, 1, 1], [], []>} : vector<16x32xbf16>, vector<32x32xbf16>, vector<16x32xf32> -> vector<16x32xf32>
    %c0_21 = arith.constant 0 : index
    %c0_22 = arith.constant 0 : index
    %23 = vector.load %arg11[%c0_21, %c0_22] : memref<1x32xf32, #tpu.memory_space<vmem>>, vector<1x32xf32>
    %24 = vector.broadcast %23 : vector<1x32xf32> to vector<16x32xf32>
    %25 = arith.addf %22, %24 : vector<16x32xf32>
    %c0_23 = arith.constant 0 : index
    %c0_24 = arith.constant 0 : index
    %26 = vector.load %arg12[%c0_23, %c0_24] : memref<32x32xbf16, #tpu.memory_space<vmem>>, vector<32x32xbf16>
    %cst_25 = arith.constant dense<0.000000e+00> : vector<16x32xf32>
    %27 = tpu.matmul %15, %26, %cst_25 {dimension_numbers = #tpu.dot_dimension_numbers<[1], [0], [0], [1], [0, 0, 1, 1], [], []>} : vector<16x32xbf16>, vector<32x32xbf16>, vector<16x32xf32> -> vector<16x32xf32>
    %c0_26 = arith.constant 0 : index
    %c0_27 = arith.constant 0 : index
    %28 = vector.load %arg13[%c0_26, %c0_27] : memref<1x32xf32, #tpu.memory_space<vmem>>, vector<1x32xf32>
    %29 = vector.broadcast %28 : vector<1x32xf32> to vector<16x32xf32>
    %30 = arith.addf %27, %29 : vector<16x32xf32>
    %31 = arith.truncf %20 : vector<8x32xf32> to vector<8x32xbf16>
    %32 = arith.truncf %25 : vector<16x32xf32> to vector<16x32xbf16>
    %cst_28 = arith.constant dense<0.000000e+00> : vector<8x16xf32>
    %33 = tpu.matmul %31, %32, %cst_28 {dimension_numbers = #tpu.dot_dimension_numbers<[1], [1], [0], [0], [0, 0, 1, 0], [], []>} : vector<8x32xbf16>, vector<16x32xbf16>, vector<8x16xf32> -> vector<8x16xf32>
    %cst_29 = arith.constant 0.176776692 : f32
    %34 = vector.broadcast %cst_29 : f32 to vector<8x16xf32>
    %35 = arith.mulf %33, %34 : vector<8x16xf32>
    %c0_30 = arith.constant 0 : index
    %c0_31 = arith.constant 0 : index
    %36 = vector.load %arg3[%c0_30, %c0_31] : memref<8x16xf32, #tpu.memory_space<vmem>>, vector<8x16xf32>
    %37 = arith.addf %35, %36 : vector<8x16xf32>
    %cst_32 = arith.constant dense<0xFF800000> : vector<8xf32>
    %38 = vector.multi_reduction <maximumf>, %37, %cst_32 [1] : vector<8x16xf32> to vector<8xf32>
    %39 = vector.shape_cast %38 : vector<8xf32> to vector<8x1xf32>
    %40 = vector.broadcast %39 : vector<8x1xf32> to vector<8x16xf32>
    %41 = arith.subf %37, %40 : vector<8x16xf32>
    %42 = math.exp %41 : vector<8x16xf32>
    %cst_33 = arith.constant dense<0.000000e+00> : vector<8xf32>
    %43 = vector.multi_reduction <add>, %42, %cst_33 [1] : vector<8x16xf32> to vector<8xf32>
    %44 = vector.shape_cast %43 : vector<8xf32> to vector<8x1xf32>
    %45 = arith.truncf %42 : vector<8x16xf32> to vector<8x16xbf16>
    %46 = arith.truncf %30 : vector<16x32xf32> to vector<16x32xbf16>
    %cst_34 = arith.constant dense<0.000000e+00> : vector<8x32xf32>
    %47 = tpu.matmul %45, %46, %cst_34 {dimension_numbers = #tpu.dot_dimension_numbers<[1], [0], [0], [1], [0, 0, 1, 1], [], []>} : vector<8x16xbf16>, vector<16x32xbf16>, vector<8x32xf32> -> vector<8x32xf32>
    %48 = tpu.reciprocal %44 {approx = true} : vector<8x1xf32> -> vector<8x1xf32>
    %49 = vector.broadcast %48 : vector<8x1xf32> to vector<8x32xf32>
    %50 = arith.mulf %47, %49 : vector<8x32xf32>
    %51 = arith.truncf %50 : vector<8x32xf32> to vector<8x32xbf16>
    %c0_35 = arith.constant 0 : index
    %c0_36 = arith.constant 0 : index
    %52 = vector.load %arg14[%c0_35, %c0_36] : memref<32x32xbf16, #tpu.memory_space<vmem>>, vector<32x32xbf16>
    %cst_37 = arith.constant dense<0.000000e+00> : vector<8x32xf32>
    %53 = tpu.matmul %51, %52, %cst_37 {dimension_numbers = #tpu.dot_dimension_numbers<[1], [0], [0], [1], [0, 0, 1, 1], [], []>} : vector<8x32xbf16>, vector<32x32xbf16>, vector<8x32xf32> -> vector<8x32xf32>
    %c0_38 = arith.constant 0 : index
    %c0_39 = arith.constant 0 : index
    %54 = vector.load %arg15[%c0_38, %c0_39] : memref<1x32xf32, #tpu.memory_space<vmem>>, vector<1x32xf32>
    %55 = vector.broadcast %54 : vector<1x32xf32> to vector<8x32xf32>
    %56 = arith.addf %53, %55 : vector<8x32xf32>
    %57 = arith.extf %0 : vector<8x32xbf16> to vector<8x32xf32>
    %58 = arith.addf %57, %56 : vector<8x32xf32>
    %59 = arith.truncf %58 : vector<8x32xf32> to vector<8x32xbf16>
    %c0_40 = arith.constant 0 : index
    %c0_41 = arith.constant 0 : index
    %60 = vector.load %arg16[%c0_40, %c0_41] : memref<8x32xbf16, #tpu.memory_space<vmem>>, vector<8x32xbf16>
    tpu.vector_store %arg16[%c0_40, %c0_41], %59 {strides = array<i32>} : memref<8x32xbf16, #tpu.memory_space<vmem>>, vector<8x32xbf16>,
    return
  }
  func.func @transform_0(%arg0: i32) -> (i32, i32) {
    %c0_i32 = arith.constant 0 : i32
    %c0_i32_0 = arith.constant 0 : i32
    %c0_i32_1 = arith.constant 0 : i32
    return %c0_i32, %c0_i32_0 : i32, i32
  }
  func.func @transform_1(%arg0: i32) -> (i32, i32) {
    %c0_i32 = arith.constant 0 : i32
    %c0_i32_0 = arith.constant 0 : i32
    %c0_i32_1 = arith.constant 0 : i32
    return %c0_i32, %c0_i32_0 : i32, i32
  }
  func.func @transform_2(%arg0: i32) -> (i32, i32) {
    %c0_i32 = arith.constant 0 : i32
    %c0_i32_0 = arith.constant 0 : i32
    %c0_i32_1 = arith.constant 0 : i32
    return %c0_i32, %c0_i32_0 : i32, i32
  }
  func.func @transform_3(%arg0: i32) -> (i32, i32) {
    %c0_i32 = arith.constant 0 : i32
    %c0_i32_0 = arith.constant 0 : i32
    %c0_i32_1 = arith.constant 0 : i32
    return %c0_i32, %c0_i32_0 : i32, i32
  }
  func.func @transform_4(%arg0: i32) -> (i32, i32) {
    %c0_i32 = arith.constant 0 : i32
    %c0_i32_0 = arith.constant 0 : i32
    %c0_i32_1 = arith.constant 0 : i32
    return %c0_i32, %c0_i32_0 : i32, i32
  }
  func.func @transform_5(%arg0: i32) -> (i32, i32) {
    %c0_i32 = arith.constant 0 : i32
    %c0_i32_0 = arith.constant 0 : i32
    %c0_i32_1 = arith.constant 0 : i32
    return %c0_i32, %c0_i32_0 : i32, i32
  }
  func.func @transform_6(%arg0: i32) -> (i32, i32) {
    %c0_i32 = arith.constant 0 : i32
    %c0_i32_0 = arith.constant 0 : i32
    %c0_i32_1 = arith.constant 0 : i32
    return %c0_i32, %c0_i32_0 : i32, i32
  }
  func.func @transform_7(%arg0: i32) -> (i32, i32) {
    %c0_i32 = arith.constant 0 : i32
    %c0_i32_0 = arith.constant 0 : i32
    %c0_i32_1 = arith.constant 0 : i32
    return %c0_i32, %c0_i32_0 : i32, i32
  }
  func.func @transform_8(%arg0: i32) -> (i32, i32) {
    %c0_i32 = arith.constant 0 : i32
    %c0_i32_0 = arith.constant 0 : i32
    %c0_i32_1 = arith.constant 0 : i32
    return %c0_i32, %c0_i32_0 : i32, i32
  }
  func.func @transform_9(%arg0: i32) -> (i32, i32) {
    %c0_i32 = arith.constant 0 : i32
    %c0_i32_0 = arith.constant 0 : i32
    %c0_i32_1 = arith.constant 0 : i32
    return %c0_i32, %c0_i32_0 : i32, i32
  }
  func.func @transform_10(%arg0: i32) -> (i32, i32) {
    %c0_i32 = arith.constant 0 : i32
    %c0_i32_0 = arith.constant 0 : i32
    %c0_i32_1 = arith.constant 0 : i32
    return %c0_i32, %c0_i32_0 : i32, i32
  }
  func.func @transform_11(%arg0: i32) -> (i32, i32) {
    %c0_i32 = arith.constant 0 : i32
    %c0_i32_0 = arith.constant 0 : i32
    %c0_i32_1 = arith.constant 0 : i32
    return %c0_i32, %c0_i32_0 : i32, i32
  }
  func.func @transform_12(%arg0: i32) -> (i32, i32) {
    %c0_i32 = arith.constant 0 : i32
    %c0_i32_0 = arith.constant 0 : i32
    %c0_i32_1 = arith.constant 0 : i32
    return %c0_i32, %c0_i32_0 : i32, i32
  }
  func.func @transform_13(%arg0: i32) -> (i32, i32) {
    %c0_i32 = arith.constant 0 : i32
    %c0_i32_0 = arith.constant 0 : i32
    %c0_i32_1 = arith.constant 0 : i32
    return %c0_i32, %c0_i32_0 : i32, i32
  }
  func.func @transform_14(%arg0: i32) -> (i32, i32) {
    %c0_i32 = arith.constant 0 : i32
    %c0_i32_0 = arith.constant 0 : i32
    %c0_i32_1 = arith.constant 0 : i32
    return %c0_i32, %c0_i32_0 : i32, i32
  }
  func.func @transform_15(%arg0: i32) -> (i32, i32) {
    %c0_i32 = arith.constant 0 : i32
    %c0_i32_0 = arith.constant 0 : i32
    %c0_i32_1 = arith.constant 0 : i32
    return %c0_i32, %c0_i32_0 : i32, i32
  }
}

module attributes {stable_mosaic.version = 11 : i64} {
  func.func @_mm_bias_act_kernel(%arg0: i32, %arg1: memref<128x8xbf16, #tpu.memory_space<vmem>>, %arg2: memref<64x128xbf16, #tpu.memory_space<vmem>>, %arg3: memref<64x1xf32, #tpu.memory_space<vmem>>, %arg4: memref<64x8xbf16, #tpu.memory_space<vmem>>) attributes {dimension_semantics = [#tpu.dimension_semantics<parallel>], iteration_bounds = array<i64: 1>, scalar_prefetch = 0 : i64, scratch_operands = 0 : i64, tpu.core_type = #tpu.core_type<tc>, window_params = [{transform_indices = @transform_0, window_bounds = array<i64: 128, 8>}, {pipeline_mode = #tpu.pipeline_mode<synchronous>, transform_indices = @transform_1, window_bounds = array<i64: 64, 128>}, {pipeline_mode = #tpu.pipeline_mode<synchronous>, transform_indices = @transform_2, window_bounds = array<i64: 64, 1>}, {transform_indices = @transform_3, window_bounds = array<i64: 64, 8>}]} {
    %c0 = arith.constant 0 : index
    %c0_0 = arith.constant 0 : index
    %0 = vector.load %arg2[%c0, %c0_0] : memref<64x128xbf16, #tpu.memory_space<vmem>>, vector<64x128xbf16>
    %c0_1 = arith.constant 0 : index
    %c0_2 = arith.constant 0 : index
    %1 = vector.load %arg1[%c0_1, %c0_2] : memref<128x8xbf16, #tpu.memory_space<vmem>>, vector<128x8xbf16>
    %cst = arith.constant dense<0.000000e+00> : vector<64x8xf32>
    %2 = tpu.matmul %0, %1, %cst {dimension_numbers = #tpu.dot_dimension_numbers<[1], [0], [0], [1], [0, 0, 1, 1], [], []>} : vector<64x128xbf16>, vector<128x8xbf16>, vector<64x8xf32> -> vector<64x8xf32>
    %c0_3 = arith.constant 0 : index
    %c0_4 = arith.constant 0 : index
    %3 = vector.load %arg3[%c0_3, %c0_4] : memref<64x1xf32, #tpu.memory_space<vmem>>, vector<64x1xf32>
    %4 = vector.broadcast %3 : vector<64x1xf32> to vector<64x8xf32>
    %5 = arith.addf %2, %4 : vector<64x8xf32>
    %cst_5 = arith.constant 0.000000e+00 : f32
    %6 = vector.broadcast %cst_5 : f32 to vector<64x8xf32>
    %7 = arith.cmpf ogt, %5, %6 : vector<64x8xf32>
    %cst_6 = arith.constant 0.00999999977 : f32
    %8 = vector.broadcast %cst_6 : f32 to vector<64x8xf32>
    %9 = arith.mulf %8, %5 : vector<64x8xf32>
    %10 = arith.select %7, %5, %9 : vector<64x8xi1>, vector<64x8xf32>
    %11 = arith.truncf %10 : vector<64x8xf32> to vector<64x8xbf16>
    %c0_7 = arith.constant 0 : index
    %c0_8 = arith.constant 0 : index
    %12 = vector.load %arg4[%c0_7, %c0_8] : memref<64x8xbf16, #tpu.memory_space<vmem>>, vector<64x8xbf16>
    tpu.vector_store %arg4[%c0_7, %c0_8], %11 {strides = array<i32>} : memref<64x8xbf16, #tpu.memory_space<vmem>>, vector<64x8xbf16>,
    return
  }
  func.func @transform_0(%arg0: i32) -> (i32, i32) {
    %c0_i32 = arith.constant 0 : i32
    %c0_i32_0 = arith.constant 0 : i32
    return %c0_i32, %arg0 : i32, i32
  }
  func.func @transform_1(%arg0: i32) -> (i32, i32) {
    %c0_i32 = arith.constant 0 : i32
    %c0_i32_0 = arith.constant 0 : i32
    %c0_i32_1 = arith.constant 0 : i32
    return %c0_i32, %c0_i32_0 : i32, i32
  }
  func.func @transform_2(%arg0: i32) -> (i32, i32) {
    %c0_i32 = arith.constant 0 : i32
    %c0_i32_0 = arith.constant 0 : i32
    %c0_i32_1 = arith.constant 0 : i32
    return %c0_i32, %c0_i32_0 : i32, i32
  }
  func.func @transform_3(%arg0: i32) -> (i32, i32) {
    %c0_i32 = arith.constant 0 : i32
    %c0_i32_0 = arith.constant 0 : i32
    return %c0_i32, %arg0 : i32, i32
  }
}

module attributes {stable_mosaic.version = 11 : i64} {
  func.func @_mm2_bias_act_kernel(%arg0: i32, %arg1: memref<64x32xbf16, #tpu.memory_space<vmem>>, %arg2: memref<64x32xbf16, #tpu.memory_space<vmem>>, %arg3: memref<32x64xbf16, #tpu.memory_space<vmem>>, %arg4: memref<32x64xbf16, #tpu.memory_space<vmem>>, %arg5: memref<32x1xf32, #tpu.memory_space<vmem>>, %arg6: memref<32x32xbf16, #tpu.memory_space<vmem>>) attributes {dimension_semantics = [#tpu.dimension_semantics<parallel>], iteration_bounds = array<i64: 1>, scalar_prefetch = 0 : i64, scratch_operands = 0 : i64, tpu.core_type = #tpu.core_type<tc>, window_params = [{transform_indices = @transform_0, window_bounds = array<i64: 64, 32>}, {transform_indices = @transform_1, window_bounds = array<i64: 64, 32>}, {pipeline_mode = #tpu.pipeline_mode<synchronous>, transform_indices = @transform_2, window_bounds = array<i64: 32, 64>}, {pipeline_mode = #tpu.pipeline_mode<synchronous>, transform_indices = @transform_3, window_bounds = array<i64: 32, 64>}, {pipeline_mode = #tpu.pipeline_mode<synchronous>, transform_indices = @transform_4, window_bounds = array<i64: 32, 1>}, {transform_indices = @transform_5, window_bounds = array<i64: 32, 32>}]} {
    %c0 = arith.constant 0 : index
    %c0_0 = arith.constant 0 : index
    %0 = vector.load %arg3[%c0, %c0_0] : memref<32x64xbf16, #tpu.memory_space<vmem>>, vector<32x64xbf16>
    %c0_1 = arith.constant 0 : index
    %c0_2 = arith.constant 0 : index
    %1 = vector.load %arg1[%c0_1, %c0_2] : memref<64x32xbf16, #tpu.memory_space<vmem>>, vector<64x32xbf16>
    %cst = arith.constant dense<0.000000e+00> : vector<32x32xf32>
    %2 = tpu.matmul %0, %1, %cst {dimension_numbers = #tpu.dot_dimension_numbers<[1], [0], [0], [1], [0, 0, 1, 1], [], []>} : vector<32x64xbf16>, vector<64x32xbf16>, vector<32x32xf32> -> vector<32x32xf32>
    %c0_3 = arith.constant 0 : index
    %c0_4 = arith.constant 0 : index
    %3 = vector.load %arg4[%c0_3, %c0_4] : memref<32x64xbf16, #tpu.memory_space<vmem>>, vector<32x64xbf16>
    %c0_5 = arith.constant 0 : index
    %c0_6 = arith.constant 0 : index
    %4 = vector.load %arg2[%c0_5, %c0_6] : memref<64x32xbf16, #tpu.memory_space<vmem>>, vector<64x32xbf16>
    %cst_7 = arith.constant dense<0.000000e+00> : vector<32x32xf32>
    %5 = tpu.matmul %3, %4, %cst_7 {dimension_numbers = #tpu.dot_dimension_numbers<[1], [0], [0], [1], [0, 0, 1, 1], [], []>} : vector<32x64xbf16>, vector<64x32xbf16>, vector<32x32xf32> -> vector<32x32xf32>
    %6 = arith.addf %2, %5 : vector<32x32xf32>
    %c0_8 = arith.constant 0 : index
    %c0_9 = arith.constant 0 : index
    %7 = vector.load %arg5[%c0_8, %c0_9] : memref<32x1xf32, #tpu.memory_space<vmem>>, vector<32x1xf32>
    %8 = vector.broadcast %7 : vector<32x1xf32> to vector<32x32xf32>
    %9 = arith.addf %6, %8 : vector<32x32xf32>
    %cst_10 = arith.constant 0.000000e+00 : f32
    %10 = vector.broadcast %cst_10 : f32 to vector<32x32xf32>
    %11 = arith.cmpf ogt, %9, %10 : vector<32x32xf32>
    %cst_11 = arith.constant 0.00999999977 : f32
    %12 = vector.broadcast %cst_11 : f32 to vector<32x32xf32>
    %13 = arith.mulf %12, %9 : vector<32x32xf32>
    %14 = arith.select %11, %9, %13 : vector<32x32xi1>, vector<32x32xf32>
    %15 = arith.truncf %14 : vector<32x32xf32> to vector<32x32xbf16>
    %c0_12 = arith.constant 0 : index
    %c0_13 = arith.constant 0 : index
    %16 = vector.load %arg6[%c0_12, %c0_13] : memref<32x32xbf16, #tpu.memory_space<vmem>>, vector<32x32xbf16>
    tpu.vector_store %arg6[%c0_12, %c0_13], %15 {strides = array<i32>} : memref<32x32xbf16, #tpu.memory_space<vmem>>, vector<32x32xbf16>,
    return
  }
  func.func @transform_0(%arg0: i32) -> (i32, i32) {
    %c0_i32 = arith.constant 0 : i32
    %c0_i32_0 = arith.constant 0 : i32
    return %c0_i32, %arg0 : i32, i32
  }
  func.func @transform_1(%arg0: i32) -> (i32, i32) {
    %c0_i32 = arith.constant 0 : i32
    %c0_i32_0 = arith.constant 0 : i32
    return %c0_i32, %arg0 : i32, i32
  }
  func.func @transform_2(%arg0: i32) -> (i32, i32) {
    %c0_i32 = arith.constant 0 : i32
    %c0_i32_0 = arith.constant 0 : i32
    %c0_i32_1 = arith.constant 0 : i32
    return %c0_i32, %c0_i32_0 : i32, i32
  }
  func.func @transform_3(%arg0: i32) -> (i32, i32) {
    %c0_i32 = arith.constant 0 : i32
    %c0_i32_0 = arith.constant 0 : i32
    %c0_i32_1 = arith.constant 0 : i32
    return %c0_i32, %c0_i32_0 : i32, i32
  }
  func.func @transform_4(%arg0: i32) -> (i32, i32) {
    %c0_i32 = arith.constant 0 : i32
    %c0_i32_0 = arith.constant 0 : i32
    %c0_i32_1 = arith.constant 0 : i32
    return %c0_i32, %c0_i32_0 : i32, i32
  }
  func.func @transform_5(%arg0: i32) -> (i32, i32) {
    %c0_i32 = arith.constant 0 : i32
    %c0_i32_0 = arith.constant 0 : i32
    return %c0_i32, %arg0 : i32, i32
  }
}

module attributes {stable_mosaic.version = 11 : i64} {
  func.func @_mm2_mask_kernel(%arg0: i32, %arg1: memref<32x128xbf16, #tpu.memory_space<vmem>>, %arg2: memref<32x128xbf16, #tpu.memory_space<vmem>>, %arg3: memref<8x32xbf16, #tpu.memory_space<vmem>>, %arg4: memref<8x32xbf16, #tpu.memory_space<vmem>>, %arg5: memref<8x1xf32, #tpu.memory_space<vmem>>, %arg6: memref<8x128xf32, #tpu.memory_space<vmem>>, %arg7: memref<8x128xf32, #tpu.memory_space<vmem>>) attributes {dimension_semantics = [#tpu.dimension_semantics<parallel>], iteration_bounds = array<i64: 1>, scalar_prefetch = 0 : i64, scratch_operands = 0 : i64, tpu.core_type = #tpu.core_type<tc>, window_params = [{transform_indices = @transform_0, window_bounds = array<i64: 32, 128>}, {transform_indices = @transform_1, window_bounds = array<i64: 32, 128>}, {pipeline_mode = #tpu.pipeline_mode<synchronous>, transform_indices = @transform_2, window_bounds = array<i64: 8, 32>}, {pipeline_mode = #tpu.pipeline_mode<synchronous>, transform_indices = @transform_3, window_bounds = array<i64: 8, 32>}, {pipeline_mode = #tpu.pipeline_mode<synchronous>, transform_indices = @transform_4, window_bounds = array<i64: 8, 1>}, {transform_indices = @transform_5, window_bounds = array<i64: 8, 128>}, {transform_indices = @transform_6, window_bounds = array<i64: 8, 128>}]} {
    %c0 = arith.constant 0 : index
    %c0_0 = arith.constant 0 : index
    %0 = vector.load %arg3[%c0, %c0_0] : memref<8x32xbf16, #tpu.memory_space<vmem>>, vector<8x32xbf16>
    %c0_1 = arith.constant 0 : index
    %c0_2 = arith.constant 0 : index
    %1 = vector.load %arg1[%c0_1, %c0_2] : memref<32x128xbf16, #tpu.memory_space<vmem>>, vector<32x128xbf16>
    %cst = arith.constant dense<0.000000e+00> : vector<8x128xf32>
    %2 = tpu.matmul %0, %1, %cst {dimension_numbers = #tpu.dot_dimension_numbers<[1], [0], [0], [1], [0, 0, 1, 1], [], []>} : vector<8x32xbf16>, vector<32x128xbf16>, vector<8x128xf32> -> vector<8x128xf32>
    %c0_3 = arith.constant 0 : index
    %c0_4 = arith.constant 0 : index
    %3 = vector.load %arg4[%c0_3, %c0_4] : memref<8x32xbf16, #tpu.memory_space<vmem>>, vector<8x32xbf16>
    %c0_5 = arith.constant 0 : index
    %c0_6 = arith.constant 0 : index
    %4 = vector.load %arg2[%c0_5, %c0_6] : memref<32x128xbf16, #tpu.memory_space<vmem>>, vector<32x128xbf16>
    %cst_7 = arith.constant dense<0.000000e+00> : vector<8x128xf32>
    %5 = tpu.matmul %3, %4, %cst_7 {dimension_numbers = #tpu.dot_dimension_numbers<[1], [0], [0], [1], [0, 0, 1, 1], [], []>} : vector<8x32xbf16>, vector<32x128xbf16>, vector<8x128xf32> -> vector<8x128xf32>
    %6 = arith.addf %2, %5 : vector<8x128xf32>
    %c0_8 = arith.constant 0 : index
    %c0_9 = arith.constant 0 : index
    %7 = vector.load %arg5[%c0_8, %c0_9] : memref<8x1xf32, #tpu.memory_space<vmem>>, vector<8x1xf32>
    %8 = vector.broadcast %7 : vector<8x1xf32> to vector<8x128xf32>
    %9 = arith.addf %6, %8 : vector<8x128xf32>
    %10 = vector.extract_strided_slice %9 {offsets = [0, 0], sizes = [4, 128], strides = [1, 1]} : vector<8x128xf32> to vector<4x128xf32>
    %11 = vector.extract_strided_slice %9 {offsets = [4, 0], sizes = [4, 128], strides = [1, 1]} : vector<8x128xf32> to vector<4x128xf32>
    %c0_10 = arith.constant 0 : index
    %c0_11 = arith.constant 0 : index
    %12 = vector.load %arg6[%c0_10, %c0_11] : memref<8x128xf32, #tpu.memory_space<vmem>>, vector<4x128xf32>
    %c4 = arith.constant 4 : index
    %c0_12 = arith.constant 0 : index
    %13 = vector.load %arg6[%c4, %c0_12] : memref<8x128xf32, #tpu.memory_space<vmem>>, vector<4x128xf32>
    %14 = arith.mulf %10, %10 : vector<4x128xf32>
    %15 = arith.mulf %11, %11 : vector<4x128xf32>
    %16 = arith.addf %14, %15 : vector<4x128xf32>
    %17 = math.sqrt %16 : vector<4x128xf32>
    %18 = math.tanh %17 : vector<4x128xf32>
    %cst_13 = arith.constant 9.99999996E-13 : f32
    %19 = vector.broadcast %cst_13 : f32 to vector<4x128xf32>
    %20 = arith.addf %16, %19 : vector<4x128xf32>
    %21 = math.rsqrt %20 : vector<4x128xf32>
    %22 = arith.mulf %18, %21 : vector<4x128xf32>
    %23 = arith.mulf %10, %22 : vector<4x128xf32>
    %24 = arith.mulf %11, %22 : vector<4x128xf32>
    %25 = arith.mulf %23, %12 : vector<4x128xf32>
    %26 = arith.mulf %24, %13 : vector<4x128xf32>
    %27 = arith.subf %25, %26 : vector<4x128xf32>
    %28 = arith.mulf %23, %13 : vector<4x128xf32>
    %29 = arith.mulf %24, %12 : vector<4x128xf32>
    %30 = arith.addf %28, %29 : vector<4x128xf32>
    %31 = tpu.concatenate %27, %30 in 0 : vector<4x128xf32>, vector<4x128xf32> -> vector<8x128xf32>
    %c0_14 = arith.constant 0 : index
    %c0_15 = arith.constant 0 : index
    %32 = vector.load %arg7[%c0_14, %c0_15] : memref<8x128xf32, #tpu.memory_space<vmem>>, vector<8x128xf32>
    tpu.vector_store %arg7[%c0_14, %c0_15], %31 {strides = array<i32>} : memref<8x128xf32, #tpu.memory_space<vmem>>, vector<8x128xf32>,
    return
  }
  func.func @transform_0(%arg0: i32) -> (i32, i32) {
    %c0_i32 = arith.constant 0 : i32
    %c0_i32_0 = arith.constant 0 : i32
    return %c0_i32, %arg0 : i32, i32
  }
  func.func @transform_1(%arg0: i32) -> (i32, i32) {
    %c0_i32 = arith.constant 0 : i32
    %c0_i32_0 = arith.constant 0 : i32
    return %c0_i32, %arg0 : i32, i32
  }
  func.func @transform_2(%arg0: i32) -> (i32, i32) {
    %c0_i32 = arith.constant 0 : i32
    %c0_i32_0 = arith.constant 0 : i32
    %c0_i32_1 = arith.constant 0 : i32
    return %c0_i32, %c0_i32_0 : i32, i32
  }
  func.func @transform_3(%arg0: i32) -> (i32, i32) {
    %c0_i32 = arith.constant 0 : i32
    %c0_i32_0 = arith.constant 0 : i32
    %c0_i32_1 = arith.constant 0 : i32
    return %c0_i32, %c0_i32_0 : i32, i32
  }
  func.func @transform_4(%arg0: i32) -> (i32, i32) {
    %c0_i32 = arith.constant 0 : i32
    %c0_i32_0 = arith.constant 0 : i32
    %c0_i32_1 = arith.constant 0 : i32
    return %c0_i32, %c0_i32_0 : i32, i32
  }
  func.func @transform_5(%arg0: i32) -> (i32, i32) {
    %c0_i32 = arith.constant 0 : i32
    %c0_i32_0 = arith.constant 0 : i32
    return %c0_i32, %arg0 : i32, i32
  }
  func.func @transform_6(%arg0: i32) -> (i32, i32) {
    %c0_i32 = arith.constant 0 : i32
    %c0_i32_0 = arith.constant 0 : i32
    return %c0_i32, %arg0 : i32, i32
  }
}

</mosaic_0001>

<bundles_post_ra>
// kernel: dcunet10_cross_attention.7
= control target key start
LH: loop header
LB: loop body
LE: loop exit
PB: predicated region body
PF: predicated region fallthrough
CT: control target
= control target key end

     0   :  { %vm38_vm0 = vcmask 1040384   ;;  %v111_v0 = vmov 0.0   ;;  %vm112_vm1 = vmmov 0   ;;  %v113_v3 = vmov 0   ;;  %s149_s0 = inlined_call_operand.vmem [shape: bf16[18,128], index: 0, kind: input, shape index: {}]   ;;  %s150_s2 = inlined_call_operand.vmem [shape: f32[8,1], index: 2, kind: input, shape index: {}]   ;;  %s151_s1 = inlined_call_operand.vmem [shape: bf16[8,18], index: 1, kind: input, shape index: {}]   ;;  %s152_s3 = inlined_call_operand.vmem [shape: bf16[8,128], index: 3, kind: output, shape index: {}]  }
   0x1   :  { %97 = vmatprep.subr.bf16.mxu0 %v111_v0  ;;  %v109_v1 = vld [vmem:[%s149_s0] sm:$0xff]   ;;  %101 = vmatprep.mubr.msk.bf16.mxu0 %vm112_vm1, %v111_v0  ;;  %v110_v2 = vld [vmem:[%s149_s0 + $0x8] ss:$0 sps:$4 sm:$0x11]   ;;  %vm34_vm2 = vcmask 146432  }
   0x2   :  { %108 = vset.pattern.permute.xlu0 %v113_v3  ;;  %v19_v4 = vld [vmem:[%s150_s2] sm:$0xff]  ;;  %98 = vmatpush3.bf16.msra.mxu0 %v109_v1  ;;  %v40_v5 = vsel %vm38_vm0, %v110_v2, 0 }
   0x3   :  { %22 = vperm.xlu0 %108, %v19_v4   ;;  %99 = vmatprep.subr.bf16.mxu0 %v111_v0  ;;  %v15_v6 = vld [vmem:[%s151_s1] sm:$0xf] }
   0x6   :  { %100 = vmatpush3.bf16.msra.mxu0 %v40_v5 }
   0x9   :  { %102 = vmatmul.mubr.msk.bf16.vlgmr.msra.gmra.mrb[0].mxu0 %vm34_vm2, %v15_v6 }
  0x82   :  { %v23_v7 = vpop.permute.xlu0 %22 }
  0xdc   :  { %v76_v8 = vpop.f32.mrb[0].mxu0 }
  0xdd   :  { %v77_v9 = vadd.f32 %v76_v8, %v23_v7  ;;  %v103_v10 = vpop.f32.mrb[1].mxu0 }
  0xde   :  { %v79_v11 = vpop.f32.mrb[2].mxu0 }
  0xdf   :  { %vm82_vm3 = vcmp.gt.f32.partialorder %v77_v9, 0.0  ;;  %v83_v12 = vmul.f32 0.01, %v77_v9  ;;  %v104_v13 = vpop.f32.mrb[3].mxu0 }
  0xe1   :  { %v84_v14 = vsel %vm82_vm3, %v77_v9, %v83_v12 }
  0xe2   :  { %v85_v15 = vpack.c.bf16 %v84_v14, %v84_v14 }
  0xe4   :  { %86 = vst [vmem:[%s152_s3] sm:$0xf] %v85_v15 }

// kernel: dcunet10_cross_attention.8
= control target key start
LH: loop header
LB: loop body
LE: loop exit
PB: predicated region body
PF: predicated region fallthrough
CT: control target
= control target key end

     0   :  { %v181_v0 = vmov 0.0   ;;  %vm182_vm0 = vmmov 0   ;;  %v183_v2 = vmov 0   ;;  %vm74_vm1 = vcmask 1043456   ;;  %s234_s0 = inlined_call_operand.vmem [shape: bf16[72,32], index: 0, kind: input, shape index: {}]   ;;  %s235_s2 = inlined_call_operand.vmem [shape: f32[16,1], index: 2, kind: input, shape index: {}]   ;;  %s236_s1 = inlined_call_operand.vmem [shape: bf16[16,72], index: 1, kind: input, shape index: {}]   ;;  %s237_s3 = inlined_call_operand.vmem [shape: bf16[16,32], index: 3, kind: output, shape index: {}]  }
   0x1   :  { %157 = vmatprep.subr.bf16.mxu0 %v181_v0  ;;  %v175_v1 = vld [vmem:[%s234_s0] sm:$0xff]   ;;  %167 = vmatprep.mubr.msk.bf16.mxu0 %vm182_vm0, %v181_v0  ;;  %v176_v3 = vld [vmem:[%s234_s0 + $0x8] sm:$0xff]   ;;  %v177_v5 = vld [vmem:[%s234_s0 + $0x10] sm:$0xff]   ;;  %vm70_vm2 = vcmask 588800   ;;  %vm133_vm4 = vcmask 257024  }
   0x2   :  { %174 = vset.pattern.permute.xlu0 %v183_v2  ;;  %158 = vmatpush3.bf16.msra.mxu0 %v175_v1  ;;  %v26_v4 = vld [vmem:[%s235_s2] sm:$0xff]  ;;  %v27_v6 = vld [vmem:[%s235_s2 + $0x8] sm:$0xff]  ;;  %v178_v7 = vld [vmem:[%s234_s0 + $0x18] sm:$0xff]  }
   0x3   :  { %159 = vmatprep.subr.bf16.mxu0 %v181_v0  ;;  %30 = vperm.xlu0 %174, %v26_v4   ;;  %v179_v8 = vld [vmem:[%s234_s0 + $0x20] ss:$0 sps:$4 sm:$0xff]  }
   0x4   :  { %v76_v9 = vsel %vm74_vm1, %v179_v8, 0  ;;  %v180_v10 = vld [vmem:[%s236_s1] sm:$0xff]  }
   0x6   :  { %160 = vmatpush3.bf16.msra.mxu0 %v176_v3 }
   0x7   :  { %161 = vmatprep.subr.bf16.mxu0 %v181_v0  ;;  %35 = vperm.xlu0 %174, %v27_v6  }
   0xa   :  { %162 = vmatpush3.bf16.msra.mxu0 %v177_v5 }
   0xb   :  { %163 = vmatprep.subr.bf16.mxu0 %v181_v0 }
   0xe   :  { %164 = vmatpush3.bf16.msra.mxu0 %v178_v7 }
   0xf   :  { %165 = vmatprep.subr.bf16.mxu0 %v181_v0 }
  0x12   :  { %166 = vmatpush3.bf16.msra.mxu0 %v76_v9 }
  0x15   :  { %168 = vmatmul.mubr.msk.bf16.vlgmr.msra.gmra.mrb[0].mxu0 %vm70_vm2, %v180_v10 }
  0x82   :  { %v31_v11 = vpop.permute.xlu0 %30 }
  0x86   :  { %v36_v15 = vpop.permute.xlu0 %35 }
  0xe8   :  { %v112_v12 = vpop.f32.mrb[0].mxu0 }
  0xe9   :  { %v113_v13 = vadd.f32 %v112_v12, %v31_v11  ;;  %v169_v14 = vpop.f32.mrb[1].mxu0 }
  0xea   :  { %v115_v16 = vpop.f32.mrb[2].mxu0 }
  0xeb   :  { %vm119_vm3 = vcmp.gt.f32.partialorder %v113_v13, 0.0  ;;  %v121_v17 = vmul.f32 0.01, %v113_v13  ;;  %v116_v18 = vadd.f32 %v115_v16, %v36_v15  ;;  %v170_v19 = vpop.f32.mrb[3].mxu0 }
  0xed   :  { %v123_v20 = vsel %vm119_vm3, %v113_v13, %v121_v17  ;;  %vm120_vm5 = vcmp.gt.f32.partialorder %v116_v18, 0.0  ;;  %v122_v21 = vmul.f32 0.01, %v116_v18 }
  0xee   :  { %v149_v22 = vpack.c.bf16 %v123_v20, %v123_v20 }
  0xef   :  { %v124_v23 = vsel %vm120_vm5, %v116_v18, %v122_v21 }
  0xf0   :  { %134 = vst.msk [vmem:[%s237_s3] sm:$0xf] %vm133_vm4, %v149_v22  ;;  %v150_v24 = vpack.c.bf16 %v124_v23, %v124_v23 }
  0xf2   :  { %135 = vst.msk [vmem:[%s237_s3 + $0x4] sm:$0xf] %vm133_vm4, %v150_v24 }

// kernel: dcunet10_cross_attention.9
= control target key start
LH: loop header
LB: loop body
LE: loop exit
PB: predicated region body
PF: predicated region fallthrough
CT: control target
= control target key end

     0   :  { %v285_v0 = vmov 0   ;;  %vm133_vm0 = vcmask 130048   ;;  %vm217_vm3 = vcmask 60416   ;;  %s369_s0 = inlined_call_operand.vmem [shape: bf16[144,8], index: 0, kind: input, shape index: {}]   ;;  %s370_s1 = inlined_call_operand.vmem [shape: bf16[32,144], index: 1, kind: input, shape index: {}]   ;;  %s371_s2 = inlined_call_operand.vmem [shape: f32[32,1], index: 2, kind: input, shape index: {}]   ;;  %s372_s3 = inlined_call_operand.vmem [shape: bf16[32,8], index: 3, kind: output, shape index: {}]  }
   0x1   :  { %140 = vmatprep.subr.bf16.mxu0 %v285_v0  ;;  %249 = vmatprep.subr.bf16.mxu1 %v285_v0  ;;  %v270_v1 = vld [vmem:[%s369_s0] sm:$0xff]   ;;  %v271_v2 = vld [vmem:[%s369_s0 + $0x8] sm:$0xff]   ;;  %v272_v3 = vld [vmem:[%s369_s0 + $0x10] sm:$0xff]  }
   0x2   :  { %269 = vset.pattern.permute.xlu1 %v285_v0  ;;  %268 = vset.pattern.permute.xlu0 %v285_v0  ;;  %v273_v4 = vld [vmem:[%s369_s0 + $0x18] sm:$0xff]   ;;  %v281_v5 = vld [vmem:[%s370_s1 + $0x4] ss:$8 sps:$4 sm:$0xff]   ;;  %v39_v7 = vld [vmem:[%s371_s2 + $0x10] sm:$0xff] }
   0x3   :  { %141 = vmatpush1.bf16.msra.mxu0 %v270_v1  ;;  %258 = vmatpush1.bf16.msra.mxu1 %v270_v1  ;;  %v284_v6 = vld [vmem:[%s370_s1 + $0x14] ss:$8 sps:$4 sm:$0xff]   ;;  %v37_v8 = vld [vmem:[%s371_s2] sm:$0xff]  ;;  %v38_v11 = vld [vmem:[%s371_s2 + $0x8] sm:$0xff] }
   0x4   :  { %142 = vmatprep.subr.bf16.mxu0 %v285_v0  ;;  %250 = vmatprep.subr.bf16.mxu1 %v285_v0  ;;  %v40_v9 = vld [vmem:[%s371_s2 + $0x18] sm:$0xff]  ;;  %v274_v10 = vld [vmem:[%s369_s0 + $0x20] sm:$0xff]   ;;  %v275_v12 = vld [vmem:[%s369_s0 + $0x28] sm:$0xff]  }
   0x5   :  { %239 = vmatprep.mubr.msk.bf16.mxu0 %vm133_vm0, %v281_v5  ;;  %53 = vperm.xlu1 %269, %v39_v7   ;;  %v276_v13 = vld [vmem:[%s369_s0 + $0x30] sm:$0xff]   ;;  %v277_v14 = vld [vmem:[%s369_s0 + $0x38] sm:$0xff]   ;;  %v278_v15 = vld [vmem:[%s369_s0 + $0x40] sm:$0xff]  }
   0x6   :  { %240 = vmatprep.mubr.msk.bf16.mxu1 %vm133_vm0, %v284_v6  ;;  %43 = vperm.xlu0 %268, %v37_v8   ;;  %v279_v16 = vld [vmem:[%s370_s1] ss:$8 sps:$4 sm:$0xff]   ;;  %v282_v17 = vld [vmem:[%s370_s1 + $0x10] ss:$8 sps:$4 sm:$0xff]  }
   0x7   :  { %143 = vmatpush1.bf16.msra.mxu0 %v271_v2  ;;  %259 = vmatpush1.bf16.msra.mxu1 %v271_v2 }
   0x8   :  { %144 = vmatprep.subr.bf16.mxu0 %v285_v0  ;;  %251 = vmatprep.subr.bf16.mxu1 %v285_v0 }
   0x9   :  { %58 = vperm.xlu1 %269, %v40_v9  }
   0xa   :  { %48 = vperm.xlu0 %268, %v38_v11  }
   0xb   :  { %145 = vmatpush1.bf16.msra.mxu0 %v272_v3  ;;  %260 = vmatpush1.bf16.msra.mxu1 %v272_v3 }
   0xc   :  { %146 = vmatprep.subr.bf16.mxu0 %v285_v0  ;;  %252 = vmatprep.subr.bf16.mxu1 %v285_v0 }
   0xf   :  { %147 = vmatpush1.bf16.msra.mxu0 %v273_v4  ;;  %261 = vmatpush1.bf16.msra.mxu1 %v273_v4 }
  0x10   :  { %148 = vmatprep.subr.bf16.mxu0 %v285_v0  ;;  %253 = vmatprep.subr.bf16.mxu1 %v285_v0 }
  0x13   :  { %149 = vmatpush1.bf16.msra.mxu0 %v274_v10  ;;  %262 = vmatpush1.bf16.msra.mxu1 %v274_v10 }
  0x14   :  { %150 = vmatprep.subr.bf16.mxu0 %v285_v0  ;;  %254 = vmatprep.subr.bf16.mxu1 %v285_v0 }
  0x17   :  { %151 = vmatpush1.bf16.msra.mxu0 %v275_v12  ;;  %263 = vmatpush1.bf16.msra.mxu1 %v275_v12 }
  0x18   :  { %152 = vmatprep.subr.bf16.mxu0 %v285_v0  ;;  %255 = vmatprep.subr.bf16.mxu1 %v285_v0 }
  0x1b   :  { %153 = vmatpush1.bf16.msra.mxu0 %v276_v13  ;;  %264 = vmatpush1.bf16.msra.mxu1 %v276_v13 }
  0x1c   :  { %154 = vmatprep.subr.bf16.mxu0 %v285_v0  ;;  %256 = vmatprep.subr.bf16.mxu1 %v285_v0 }
  0x1f   :  { %155 = vmatpush1.bf16.msra.mxu0 %v277_v14  ;;  %265 = vmatpush1.bf16.msra.mxu1 %v277_v14 }
  0x20   :  { %156 = vmatprep.subr.bf16.mxu0 %v285_v0  ;;  %257 = vmatprep.subr.bf16.mxu1 %v285_v0 }
  0x23   :  { %157 = vmatpush1.bf16.msra.mxu0 %v278_v15  ;;  %266 = vmatpush1.bf16.msra.mxu1 %v278_v15 }
  0x26   :  { %173 = vmatmul.mubr.bf16.vlgmr.msra.gmra.mrb[0].mxu0 %v279_v16  ;;  %181 = vmatmul.mubr.bf16.vlgmr.msra.gmra.mrb[0].mxu1 %v282_v17 }
  0x84   :  { %v54_v18 = vpop.permute.xlu1 %53 }
  0x85   :  { %v44_v19 = vpop.permute.xlu0 %43 }
  0x88   :  { %v59_v28 = vpop.permute.xlu1 %58 }
  0x89   :  { %v49_v29 = vpop.permute.xlu0 %48 }
  0xf9   :  { %v174_v20 = vpop.f32.mrb[0].mxu0  ;;  %v182_v21 = vpop.f32.mrb[0].mxu1 }
  0xfa   :  { %v175_v22 = vadd.f32 %v174_v20, %v44_v19  ;;  %v183_v23 = vadd.f32 %v182_v21, %v54_v18  ;;  %v176_v24 = vpop.f32.mrb[1].mxu0  ;;  %v184_v25 = vpop.f32.mrb[1].mxu1 }
  0xfb   :  { %v177_v26 = vpop.f32.mrb[2].mxu0  ;;  %v185_v27 = vpop.f32.mrb[2].mxu1 }
  0xfc   :  { %vm189_vm1 = vcmp.gt.f32.partialorder %v175_v22, 0.0  ;;  %v193_v30 = vmul.f32 0.01, %v175_v22  ;;  %vm191_vm2 = vcmp.gt.f32.partialorder %v183_v23, 0.0  ;;  %v195_v31 = vmul.f32 0.01, %v183_v23 }
  0xfd   :  { %v178_v32 = vadd.f32 %v177_v26, %v49_v29  ;;  %v186_v33 = vadd.f32 %v185_v27, %v59_v28  ;;  %v179_v34 = vpop.f32.mrb[3].mxu0  ;;  %v187_v35 = vpop.f32.mrb[3].mxu1 }
  0xfe   :  { %v197_v36 = vsel %vm189_vm1, %v175_v22, %v193_v30  ;;  %v199_v37 = vsel %vm191_vm2, %v183_v23, %v195_v31 }
  0xff   :  { %v245_v38 = vpack.c.bf16 %v197_v36, %v197_v36  ;;  %v247_v39 = vpack.c.bf16 %v199_v37, %v199_v37  ;;  %vm190_vm4 = vcmp.gt.f32.partialorder %v178_v32, 0.0  ;;  %v194_v40 = vmul.f32 0.01, %v178_v32 }
 0x100   :  { %vm192_vm5 = vcmp.gt.f32.partialorder %v186_v33, 0.0  ;;  %v196_v41 = vmul.f32 0.01, %v186_v33 }
 0x101   :  { %218 = vst.msk [vmem:[%s372_s3] sm:$0xf] %vm217_vm3, %v245_v38  ;;  %220 = vst.msk [vmem:[%s372_s3 + $0x8] sm:$0xf] %vm217_vm3, %v247_v39  ;;  %v198_v42 = vsel %vm190_vm4, %v178_v32, %v194_v40 }
 0x102   :  { %v246_v43 = vpack.c.bf16 %v198_v42, %v198_v42  ;;  %v200_v44 = vsel %vm192_vm5, %v186_v33, %v196_v41 }
 0x103   :  { %v248_v45 = vpack.c.bf16 %v200_v44, %v200_v44 }
 0x104   :  { %219 = vst.msk [vmem:[%s372_s3 + $0x4] sm:$0xf] %vm217_vm3, %v246_v43 }
 0x105   :  { %221 = vst.msk [vmem:[%s372_s3 + $0xc] sm:$0xf] %vm217_vm3, %v248_v45 }

// kernel: dcunet10_cross_attention.10
= control target key start
LH: loop header
LB: loop body
LE: loop exit
PB: predicated region body
PF: predicated region fallthrough
CT: control target
= control target key end

     0   :  { %v805_v0 = vmov 0   ;;  %vm166_vm0 = vcmask 523264   ;;  %v806_v16 = vmov 0.0   ;;  %vm807_vm1 = vmmov 0   ;;  %s1024_s3 = inlined_call_operand.vmem [shape: bf16[192,32], index: 3, kind: input, shape index: {}]   ;;  %s1025_s1 = inlined_call_operand.vmem [shape: bf16[16,192], index: 1, kind: input, shape index: {}]   ;;  %s1026_s5 = inlined_call_operand.vmem [shape: bf16[32,32], index: 5, kind: input, shape index: {}]   ;;  %s1027_s7 = inlined_call_operand.vmem [shape: bf16[32,32], index: 7, kind: input, shape index: {}]   ;;  %s1028_s4 = inlined_call_operand.vmem [shape: f32[1,32], index: 4, kind: input, shape index: {}]   ;;  %s1029_s0 = inlined_call_operand.vmem [shape: bf16[8,32], index: 0, kind: input, shape index: {}]   ;;  %s1030_s9 = inlined_call_operand.vmem [shape: bf16[32,32], index: 9, kind: input, shape index: {}]   ;;  %s1031_s11 = inlined_call_operand.vmem [shape: bf16[32,32], index: 11, kind: input, shape index: {}]   ;;  %s1032_s6 = inlined_call_operand.vmem [shape: f32[1,32], index: 6, kind: input, shape index: {}]   ;;  %s1033_s10 = inlined_call_operand.vmem [shape: f32[1,32], index: 10, kind: input, shape index: {}]   ;;  %s1034_s8 = inlined_call_operand.vmem [shape: f32[1,32], index: 8, kind: input, shape index: {}]   ;;  %s1035_s12 = inlined_call_operand.vmem [shape: f32[1,32], index: 12, kind: input, shape index: {}]   ;;  %s1036_s2 = inlined_call_operand.vmem [shape: f32[8,16], index: 2, kind: input, shape index: {}]   ;;  %s1037_s13 = inlined_call_operand.vmem [shape: bf16[32,32], index: 13, kind: input, shape index: {}]   ;;  %s1038_s14 = inlined_call_operand.vmem [shape: f32[1,32], index: 14, kind: input, shape index: {}]   ;;  %s1039_s15 = inlined_call_operand.vmem [shape: bf16[8,32], index: 15, kind: output, shape index: {}]  }
   0x1   :  { %170 = vmatprep.subr.bf16.mxu0 %v805_v0  ;;  %v776_v1 = vld [vmem:[%s1024_s3] sm:$0xff]   ;;  %v777_v2 = vld [vmem:[%s1024_s3 + $0x8] sm:$0xff]   ;;  %v778_v3 = vld [vmem:[%s1024_s3 + $0x10] sm:$0xff]   ;;  %721 = vmatprep.subr.bf16.mxu1 %v806_v16  ;;  %vm237_vm2 = vcmask 261120   ;;  %vm531_vm3 = vcmask 130048   ;;  %vm658_vm4 = vcmask 257024  }
   0x2   :  { %171 = vmatpush1.bf16.msra.mxu0 %v776_v1  ;;  %v779_v4 = vld [vmem:[%s1024_s3 + $0x18] sm:$0xff]   ;;  %v790_v5 = vld [vmem:[%s1025_s1 + $0x4] ss:$8 sps:$4 sm:$0xff]   ;;  %v782_v8 = vld [vmem:[%s1024_s3 + $0x30] sm:$0xff]   ;;  %725 = vmatprep.mubr.msk.bf16.mxu1 %vm807_vm1, %v806_v16 }
   0x3   :  { %172 = vmatprep.subr.bf16.mxu0 %v805_v0  ;;  %v780_v6 = vld [vmem:[%s1024_s3 + $0x20] sm:$0xff]   ;;  %679 = vmatprep.mubr.msk.bf16.mxu0 %vm166_vm0, %v790_v5  ;;  %v781_v7 = vld [vmem:[%s1024_s3 + $0x28] sm:$0xff]   ;;  %v783_v9 = vld [vmem:[%s1024_s3 + $0x38] sm:$0xff]  }
   0x4   :  { %v784_v10 = vld [vmem:[%s1024_s3 + $0x40] sm:$0xff]   ;;  %v785_v11 = vld [vmem:[%s1024_s3 + $0x48] sm:$0xff]   ;;  %v786_v12 = vld [vmem:[%s1024_s3 + $0x50] sm:$0xff]  }
   0x5   :  { %v787_v13 = vld [vmem:[%s1024_s3 + $0x58] sm:$0xff]   ;;  %v788_v14 = vld [vmem:[%s1025_s1] ss:$8 sps:$4 sm:$0xff]  }
   0x6   :  { %173 = vmatpush1.bf16.msra.mxu0 %v777_v2  ;;  %v791_v15 = vld [vmem:[%s1026_s5] sm:$0xff]   ;;  %v792_v17 = vld [vmem:[%s1026_s5 + $0x8] sm:$0xff]  }
   0x7   :  { %174 = vmatprep.subr.bf16.mxu0 %v805_v0  ;;  %722 = vmatpush3.bf16.msra.mxu1 %v791_v15  ;;  %v664_v18 = vld [vmem:[%s1028_s4] ss:$0 sm:$0xff]  ;;  %v794_v29 = vld [vmem:[%s1027_s7 + $0x8] sm:$0xff]  }
   0x8   :  { %723 = vmatprep.subr.bf16.mxu1 %v806_v16  ;;  %v793_v27 = vld [vmem:[%s1027_s7] sm:$0xff]   ;;  %v796_v32 = vld [vmem:[%s1030_s9 + $0x8] sm:$0xff]  }
   0x9   :  { %v960_v30 = vld [vmem:[%s1029_s0] sm:$0xf]  ;;  %v798_v42 = vld [vmem:[%s1031_s11 + $0x8] sm:$0xff]  }
   0xa   :  { %175 = vmatpush1.bf16.msra.mxu0 %v778_v3  ;;  %v795_v31 = vld [vmem:[%s1030_s9] sm:$0xff]  }
   0xb   :  { %176 = vmatprep.subr.bf16.mxu0 %v805_v0  ;;  %724 = vmatpush3.bf16.msra.mxu1 %v792_v17  ;;  %v680_v33 = vld [vmem:[%s1032_s6] ss:$0 sm:$0xff] }
   0xc   :  { %729 = vmatprep.subr.bf16.mxu1 %v806_v16  ;;  %v797_v40 = vld [vmem:[%s1031_s11] sm:$0xff]  }
   0xd   :  { %v688_v47 = vld [vmem:[%s1033_s10] ss:$0 sm:$0xff] }
   0xe   :  { %177 = vmatpush1.bf16.msra.mxu0 %v779_v4  ;;  %v684_v55 = vld [vmem:[%s1034_s8] ss:$0 sm:$0xff] }
   0xf   :  { %178 = vmatprep.subr.bf16.mxu0 %v805_v0  ;;  %v692_v57 = vld [vmem:[%s1035_s12] ss:$0 sm:$0xff] }
  0x10   :  { %v529_v4 = vld [vmem:[%s1036_s2] sm:$0xff] }
  0x12   :  { %179 = vmatpush1.bf16.msra.mxu0 %v780_v6 }
  0x13   :  { %180 = vmatprep.subr.bf16.mxu0 %v805_v0 }
  0x16   :  { %181 = vmatpush1.bf16.msra.mxu0 %v781_v7 }
  0x17   :  { %182 = vmatprep.subr.bf16.mxu0 %v805_v0 }
  0x1a   :  { %183 = vmatpush1.bf16.msra.mxu0 %v782_v8 }
  0x1b   :  { %184 = vmatprep.subr.bf16.mxu0 %v805_v0 }
  0x1e   :  { %185 = vmatpush1.bf16.msra.mxu0 %v783_v9 }
  0x1f   :  { %186 = vmatprep.subr.bf16.mxu0 %v805_v0 }
  0x22   :  { %187 = vmatpush1.bf16.msra.mxu0 %v784_v10 }
  0x23   :  { %188 = vmatprep.subr.bf16.mxu0 %v805_v0 }
  0x26   :  { %189 = vmatpush1.bf16.msra.mxu0 %v785_v11 }
  0x27   :  { %190 = vmatprep.subr.bf16.mxu0 %v805_v0 }
  0x2a   :  { %191 = vmatpush1.bf16.msra.mxu0 %v786_v12 }
  0x2b   :  { %192 = vmatprep.subr.bf16.mxu0 %v805_v0 }
  0x2e   :  { %193 = vmatpush1.bf16.msra.mxu0 %v787_v13 }
  0x2f   :  { %765 = vmatprep.subr.bf16.mxu0 %v806_v16 }
  0x31   :  { %203 = vmatmul.mubr.bf16.vlgmr.msra.gmra.mrb[0].mxu0 %v788_v14 }
  0x32   :  { %769 = vmatprep.mubr.msk.bf16.mxu0 %vm807_vm1, %v806_v16 }
 0x104   :  { %v204_v19 = vpop.f32.mrb[0].mxu0 }
 0x105   :  { %v205_v20 = vadd.f32 %v664_v18, %v204_v19  ;;  %v206_v21 = vpop.f32.mrb[1].mxu0  ;;  %v800_v19 = vld [vmem:[%s1037_s13 + $0x8] sm:$0xff]  }
 0x106   :  { %v207_v22 = vpop.f32.mrb[2].mxu0 }
 0x107   :  { %v208_v23 = vadd.f32 %v664_v18, %v207_v22  ;;  %v209_v24 = vpop.f32.mrb[3].mxu0  ;;  %v211_v25 = vmax.f32 %v205_v20, 0.0  ;;  %v799_v18 = vld [vmem:[%s1037_s13] sm:$0xff]  }
 0x108   :  { %766 = vmatpush3.bf16.msra.mxu0 %v799_v18 }
 0x109   :  { %v212_v26 = vmax.f32 %v208_v23, 0.0  ;;  %767 = vmatprep.subr.bf16.mxu0 %v806_v16 }
 0x10b   :  { %v213_v28 = vpack.c.bf16 %v212_v26, %v211_v25 }
 0x10c   :  { %768 = vmatpush3.bf16.msra.mxu0 %v800_v19 }
 0x10d   :  { %726 = vmatmul.mubr.msk.bf16.vlgmr.msra.gmra.mrb[0].mxu1 %vm237_vm2, %v213_v28  ;;  %v655_v28 = vunpack.c.l.bf16 %v960_v30 }
 0x10e   :  { %730 = vmatpush3.bf16.msra.mxu1 %v793_v27  ;;  %733 = vmatprep.mubr.msk.bf16.mxu1 %vm807_vm1, %v806_v16 }
 0x10f   :  { %731 = vmatprep.subr.bf16.mxu1 %v806_v16 }
 0x112   :  { %732 = vmatpush3.bf16.msra.mxu1 %v794_v29 }
 0x113   :  { %737 = vmatprep.subr.bf16.mxu1 %v806_v16 }
 0x115   :  { %734 = vmatmul.mubr.msk.bf16.vlgmr.msra.gmra.mrb[4].mxu1 %vm237_vm2, %v960_v30 }
 0x116   :  { %741 = vmatprep.mubr.msk.bf16.mxu1 %vm807_vm1, %v806_v16  ;;  %738 = vmatpush3.bf16.msra.mxu1 %v795_v31 }
 0x117   :  { %739 = vmatprep.subr.bf16.mxu1 %v806_v16 }
 0x11a   :  { %740 = vmatpush3.bf16.msra.mxu1 %v796_v32 }
 0x11b   :  { %745 = vmatprep.subr.bf16.mxu1 %v806_v16 }
 0x1e0   :  { %v275_v34 = vpop.f32.mrb[0].mxu1 }
 0x1e1   :  { %v727_v35 = vpop.f32.mrb[1].mxu1  ;;  %v276_v37 = vadd.f32 %v680_v33, %v275_v34 }
 0x1e2   :  { %v278_v36 = vpop.f32.mrb[2].mxu1 }
 0x1e3   :  { %v279_v38 = vadd.f32 %v680_v33, %v278_v36  ;;  %v728_v39 = vpop.f32.mrb[3].mxu1 }
 0x1e5   :  { %v282_v41 = vpack.c.bf16 %v279_v38, %v276_v37 }
 0x1e7   :  { %742 = vmatmul.mubr.msk.bf16.vlgmr.msra.gmra.mrb[8].mxu1 %vm237_vm2, %v282_v41 }
 0x1e8   :  { %746 = vmatpush3.bf16.msra.mxu1 %v797_v40  ;;  %749 = vmatprep.mubr.msk.bf16.mxu1 %vm807_vm1, %v806_v16  ;;  %v343_v43 = vpop.f32.mrb[4].mxu1 }
 0x1e9   :  { %747 = vmatprep.subr.bf16.mxu1 %v806_v16  ;;  %v735_v44 = vpop.f32.mrb[5].mxu1  ;;  %v344_v59 = vadd.f32 %v684_v55, %v343_v43 }
 0x1ea   :  { %v346_v45 = vpop.f32.mrb[6].mxu1 }
 0x1eb   :  { %v736_v46 = vpop.f32.mrb[7].mxu1  ;;  %v480_v1 = vpack.c.bf16 %v344_v59, %v344_v59 }
 0x1ec   :  { %748 = vmatpush3.bf16.msra.mxu1 %v798_v42 }
 0x1ed   :  { %753 = vmatprep.subr.bf16.mxu1 %v806_v16 }
 0x1ef   :  { %750 = vmatmul.mubr.msk.bf16.vlgmr.msra.gmra.mrb[12].mxu1 %vm237_vm2, %v282_v41 }
 0x1f0   :  { %755 = vmatprep.mubr.msk.bf16.mxu1 %vm807_vm1, %v806_v16 }
 0x2ba   :  { %v409_v48 = vpop.f32.mrb[8].mxu1 }
 0x2bb   :  { %v743_v49 = vpop.f32.mrb[9].mxu1  ;;  %v410_v51 = vadd.f32 %v688_v47, %v409_v48 }
 0x2bc   :  { %v412_v50 = vpop.f32.mrb[10].mxu1 }
 0x2bd   :  { %v413_v52 = vadd.f32 %v688_v47, %v412_v50  ;;  %v744_v53 = vpop.f32.mrb[11].mxu1 }
 0x2bf   :  { %v481_v54 = vpack.c.bf16 %v413_v52, %v410_v51 }
 0x2c1   :  { %v486_v56 = vsel %vm237_vm2, %v481_v54, 0 }
 0x2c2   :  { %v473_v58 = vpop.f32.mrb[12].mxu1  ;;  %754 = vmatpush3.bf16.xpose.msra.mxu1 %v486_v56 }
 0x2c3   :  { %v751_v60 = vpop.f32.mrb[13].mxu1  ;;  %759 = vmatprep.subr.bf16.mxu1 %v806_v16  ;;  %v474_v62 = vadd.f32 %v692_v57, %v473_v58 }
 0x2c4   :  { %v476_v61 = vpop.f32.mrb[14].mxu1 }
 0x2c5   :  { %v477_v63 = vadd.f32 %v692_v57, %v476_v61  ;;  %v752_v0 = vpop.f32.mrb[15].mxu1 }
 0x2c7   :  { %v542_v2 = vpack.c.bf16 %v477_v63, %v474_v62 }
 0x2c9   :  { %756 = vmatmul.mubr.msk.bf16.vlgmr.msra.gmra.mrb[16].mxu1 %vm237_vm2, %v480_v1 }
 0x2ca   :  { %760 = vmatpush3.bf16.msra.mxu1 %v542_v2  ;;  %761 = vmatprep.mubr.msk.bf16.mxu1 %vm807_vm1, %v806_v16  ;;  %v698_v16 = vld [vmem:[%s1038_s14] ss:$0 sm:$0xff] }
 0x39c   :  { %v522_v3 = vpop.f32.mrb[16].mxu1 }
 0x39d   :  { %v528_v5 = vmul.f32 0.17677669, %v522_v3  ;;  %v757_v6 = vpop.f32.mrb[17].mxu1 }
 0x39e   :  { %v525_v7 = vpop.f32.mrb[18].mxu1 }
 0x39f   :  { %v758_v8 = vpop.f32.mrb[19].mxu1  ;;  %v530_v9 = vadd.f32 %v529_v4, %v528_v5 }
 0x3a1   :  { %v532_v10 = vsel %vm531_vm3, %v530_v9, -inf }
 0x3a2   :  { %533 = vmax.xlane.f32.xlu0 %v532_v10 }
 0x42f   :  { %v534_v11 = vpop.xlane.xlu0 %533 }
 0x430   :  { %v535_v12 = vsub.f32 %v530_v9, %v534_v11 }
 0x432   :  { %v536_v13 = vmul.f32 1.442695, %v535_v12 }
 0x434   :  { %801 = vpow2.f32 %v536_v13 }
 0x43e   :  { %v802_v14 = vpop.eup %801 }
 0x43f   :  { %v538_v15 = vsel %vm531_vm3, %v802_v14, 0.0  ;;  %v541_v17 = vpack.c.bf16 %v802_v14, %v802_v14 }
 0x440   :  { %539 = vadd.xlane.f32.xlu0 %v538_v15 }
 0x441   :  { %762 = vmatmul.mubr.msk.bf16.vlgmr.msra.gmra.mrb[20].mxu1 %vm531_vm3, %v541_v17 }
 0x4cd   :  { %v540_v20 = vpop.xlane.xlu0 %539 }
 0x4ce   :  { %803 = vrcp.f32 %v540_v20 }
 0x4d8   :  { %v804_v21 = vpop.eup %803 }
 0x514   :  { %v580_v22 = vpop.f32.mrb[20].mxu1 }
 0x515   :  { %v587_v23 = vmul.f32 %v804_v21, %v580_v22  ;;  %v763_v24 = vpop.f32.mrb[21].mxu1 }
 0x516   :  { %v583_v25 = vpop.f32.mrb[22].mxu1 }
 0x517   :  { %v588_v26 = vpack.c.bf16 %v587_v23, %v587_v23  ;;  %v764_v27 = vpop.f32.mrb[23].mxu1 }
 0x519   :  { %770 = vmatmul.mubr.msk.bf16.vlgmr.msra.gmra.mrb[4].mxu0 %vm237_vm2, %v588_v26 }
 0x5ec   :  { %v649_v29 = vpop.f32.mrb[4].mxu0 }
 0x5ed   :  { %v650_v31 = vadd.f32 %v698_v16, %v649_v29  ;;  %v771_v32 = vpop.f32.mrb[5].mxu0 }
 0x5ee   :  { %v652_v33 = vpop.f32.mrb[6].mxu0 }
 0x5ef   :  { %v656_v34 = vadd.f32 %v655_v28, %v650_v31  ;;  %v772_v35 = vpop.f32.mrb[7].mxu0 }
 0x5f1   :  { %v657_v36 = vpack.c.bf16 %v656_v34, %v656_v34 }
 0x5f3   :  { %659 = vst.msk [vmem:[%s1039_s15] sm:$0xf] %vm658_vm4, %v657_v36 }

// kernel: dcunet10_cross_attention.11
= control target key start
LH: loop header
LB: loop body
LE: loop exit
PB: predicated region body
PF: predicated region fallthrough
CT: control target
= control target key end

     0   :  { %v388_v1 = vmov 0   ;;  %vm280_vm0 = vcmask 60416   ;;  %s501_s0 = inlined_call_operand.vmem [shape: bf16[128,8], index: 0, kind: input, shape index: {}]   ;;  %s502_s1 = inlined_call_operand.vmem [shape: bf16[64,128], index: 1, kind: input, shape index: {}]   ;;  %s503_s2 = inlined_call_operand.vmem [shape: f32[64,1], index: 2, kind: input, shape index: {}]   ;;  %s504_s3 = inlined_call_operand.vmem [shape: bf16[64,8], index: 3, kind: output, shape index: {}]  }
   0x1   :  { %v376_v0 = vld [vmem:[%s501_s0] sm:$0xff]   ;;  %375 = vset.pattern.permute.xlu1 %v388_v1  ;;  %374 = vset.pattern.permute.xlu0 %v388_v1  ;;  %v377_v2 = vld [vmem:[%s501_s0 + $0x8] sm:$0xff]   ;;  %v378_v3 = vld [vmem:[%s501_s0 + $0x10] sm:$0xff]  }
   0x2   :  { %333 = vmatprep.subr.bf16.mxu0 %v376_v0  ;;  %357 = vmatprep.subr.bf16.mxu1 %v376_v0  ;;  %v379_v4 = vld [vmem:[%s501_s0 + $0x18] sm:$0xff]   ;;  %v384_v5 = vld [vmem:[%s502_s1] sm:$0xff]   ;;  %v385_v6 = vld [vmem:[%s502_s1 + $0x10] sm:$0xff]  }
   0x3   :  { %334 = vmatpush3.bf16.msra.mxu0 %v376_v0  ;;  %365 = vmatpush3.bf16.msra.mxu1 %v376_v0  ;;  %v380_v7 = vld [vmem:[%s501_s0 + $0x20] sm:$0xff]   ;;  %v41_v8 = vld [vmem:[%s503_s2 + $0x10] sm:$0xff]  ;;  %v42_v10 = vld [vmem:[%s503_s2 + $0x18] sm:$0xff] }
   0x4   :  { %335 = vmatprep.subr.bf16.mxu0 %v377_v2  ;;  %358 = vmatprep.subr.bf16.mxu1 %v377_v2  ;;  %v39_v9 = vld [vmem:[%s503_s2] sm:$0xff]  ;;  %v40_v11 = vld [vmem:[%s503_s2 + $0x8] sm:$0xff]  ;;  %v382_v15 = vld [vmem:[%s501_s0 + $0x30] sm:$0xff]  }
   0x5   :  { %349 = vmatprep.mubr.bf16.mxu0 %v384_v5  ;;  %353 = vmatprep.mubr.bf16.mxu1 %v385_v6  ;;  %v381_v12 = vld [vmem:[%s501_s0 + $0x28] sm:$0xff]   ;;  %v43_v14 = vld [vmem:[%s503_s2 + $0x20] sm:$0xff]  ;;  %v46_v16 = vld [vmem:[%s503_s2 + $0x38] sm:$0xff] }
   0x6   :  { %59 = vperm.xlu1 %375, %v41_v8   ;;  %49 = vperm.xlu0 %374, %v39_v9   ;;  %v44_v13 = vld [vmem:[%s503_s2 + $0x28] sm:$0xff]  ;;  %v45_v17 = vld [vmem:[%s503_s2 + $0x30] sm:$0xff]  ;;  %v383_v18 = vld [vmem:[%s501_s0 + $0x38] sm:$0xff]  }
   0x7   :  { %336 = vmatpush3.bf16.msra.mxu0 %v377_v2  ;;  %366 = vmatpush3.bf16.msra.mxu1 %v377_v2  ;;  %v386_v19 = vld [vmem:[%s502_s1 + $0x8] sm:$0xff]   ;;  %v387_v20 = vld [vmem:[%s502_s1 + $0x18] sm:$0xff]  }
   0x8   :  { %337 = vmatprep.subr.bf16.mxu0 %v378_v3  ;;  %359 = vmatprep.subr.bf16.mxu1 %v378_v3 }
   0xa   :  { %64 = vperm.xlu1 %375, %v42_v10   ;;  %54 = vperm.xlu0 %374, %v40_v11  }
   0xb   :  { %338 = vmatpush3.bf16.msra.mxu0 %v378_v3  ;;  %367 = vmatpush3.bf16.msra.mxu1 %v378_v3 }
   0xc   :  { %339 = vmatprep.subr.bf16.mxu0 %v379_v4  ;;  %360 = vmatprep.subr.bf16.mxu1 %v379_v4 }
   0xe   :  { %74 = vperm.xlu1 %375, %v44_v13   ;;  %69 = vperm.xlu0 %374, %v43_v14  }
   0xf   :  { %340 = vmatpush3.bf16.msra.mxu0 %v379_v4  ;;  %368 = vmatpush3.bf16.msra.mxu1 %v379_v4 }
  0x10   :  { %341 = vmatprep.subr.bf16.mxu0 %v380_v7  ;;  %361 = vmatprep.subr.bf16.mxu1 %v380_v7 }
  0x12   :  { %84 = vperm.xlu1 %375, %v46_v16   ;;  %79 = vperm.xlu0 %374, %v45_v17  }
  0x13   :  { %342 = vmatpush3.bf16.msra.mxu0 %v380_v7  ;;  %369 = vmatpush3.bf16.msra.mxu1 %v380_v7 }
  0x14   :  { %343 = vmatprep.subr.bf16.mxu0 %v381_v12  ;;  %362 = vmatprep.subr.bf16.mxu1 %v381_v12 }
  0x17   :  { %344 = vmatpush3.bf16.msra.mxu0 %v381_v12  ;;  %370 = vmatpush3.bf16.msra.mxu1 %v381_v12 }
  0x18   :  { %345 = vmatprep.subr.bf16.mxu0 %v382_v15  ;;  %363 = vmatprep.subr.bf16.mxu1 %v382_v15 }
  0x1b   :  { %346 = vmatpush3.bf16.msra.mxu0 %v382_v15  ;;  %371 = vmatpush3.bf16.msra.mxu1 %v382_v15 }
  0x1c   :  { %347 = vmatprep.subr.bf16.mxu0 %v383_v18  ;;  %364 = vmatprep.subr.bf16.mxu1 %v383_v18 }
  0x1f   :  { %348 = vmatpush3.bf16.msra.mxu0 %v383_v18  ;;  %372 = vmatpush3.bf16.msra.mxu1 %v383_v18 }
  0x22   :  { %350 = vmatmul.mubr.bf16.vlgmr.msra.gmra.mrb[0].mxu0 %v386_v19  ;;  %354 = vmatmul.mubr.bf16.vlgmr.msra.gmra.mrb[0].mxu1 %v387_v20 }
  0x85   :  { %v50_v21 = vpop.permute.xlu0 %49  ;;  %v60_v22 = vpop.permute.xlu1 %59 }
  0x89   :  { %v55_v23 = vpop.permute.xlu0 %54  ;;  %v65_v24 = vpop.permute.xlu1 %64 }
  0x8d   :  { %v70_v25 = vpop.permute.xlu0 %69  ;;  %v75_v26 = vpop.permute.xlu1 %74 }
  0x91   :  { %v80_v27 = vpop.permute.xlu0 %79  ;;  %v85_v40 = vpop.permute.xlu1 %84 }
  0xf5   :  { %v351_v28 = vpop.f32.mrb[0].mxu0  ;;  %v355_v29 = vpop.f32.mrb[0].mxu1 }
  0xf6   :  { %v202_v30 = vadd.f32 %v351_v28, %v60_v22  ;;  %v218_v31 = vadd.f32 %v355_v29, %v80_v27  ;;  %v193_v32 = vpop.f32.mrb[1].mxu0  ;;  %v209_v33 = vpop.f32.mrb[1].mxu1 }
  0xf7   :  { %v194_v34 = vadd.f32 %v193_v32, %v50_v21  ;;  %v210_v35 = vadd.f32 %v209_v33, %v70_v25  ;;  %v352_v36 = vpop.f32.mrb[2].mxu0  ;;  %v356_v37 = vpop.f32.mrb[2].mxu1 }
  0xf8   :  { %vm226_vm1 = vcmp.gt.f32.partialorder %v202_v30, 0.0  ;;  %v234_v38 = vmul.f32 0.01, %v202_v30  ;;  %vm230_vm2 = vcmp.gt.f32.partialorder %v218_v31, 0.0  ;;  %v238_v39 = vmul.f32 0.01, %v218_v31 }
  0xf9   :  { %vm224_vm3 = vcmp.gt.f32.partialorder %v194_v34, 0.0  ;;  %v232_v41 = vmul.f32 0.01, %v194_v34  ;;  %vm228_vm4 = vcmp.gt.f32.partialorder %v210_v35, 0.0  ;;  %v236_v42 = vmul.f32 0.01, %v210_v35 }
  0xfa   :  { %v242_v43 = vsel %vm226_vm1, %v202_v30, %v234_v38  ;;  %v246_v44 = vsel %vm230_vm2, %v218_v31, %v238_v39  ;;  %v205_v45 = vadd.f32 %v352_v36, %v65_v24  ;;  %v221_v46 = vadd.f32 %v356_v37, %v85_v40  ;;  %v196_v47 = vpop.f32.mrb[3].mxu0  ;;  %v212_v48 = vpop.f32.mrb[3].mxu1 }
  0xfb   :  { %v315_v49 = vpack.c.bf16 %v242_v43, %v242_v43  ;;  %v319_v50 = vpack.c.bf16 %v246_v44, %v246_v44  ;;  %v240_v51 = vsel %vm224_vm3, %v194_v34, %v232_v41  ;;  %v244_v52 = vsel %vm228_vm4, %v210_v35, %v236_v42 }
  0xfc   :  { %v313_v53 = vpack.c.bf16 %v240_v51, %v240_v51  ;;  %v317_v54 = vpack.c.bf16 %v244_v52, %v244_v52  ;;  %vm227_vm5 = vcmp.gt.f32.partialorder %v205_v45, 0.0  ;;  %v235_v55 = vmul.f32 0.01, %v205_v45 }
  0xfd   :  { %283 = vst.msk [vmem:[%s504_s3 + $0x8] sm:$0xf] %vm280_vm0, %v315_v49  ;;  %287 = vst.msk [vmem:[%s504_s3 + $0x18] sm:$0xf] %vm280_vm0, %v319_v50  ;;  %vm231_vm6 = vcmp.gt.f32.partialorder %v221_v46, 0.0  ;;  %v197_v57 = vadd.f32 %v196_v47, %v55_v23  ;;  %v213_v58 = vadd.f32 %v212_v48, %v75_v26 }
  0xfe   :  { %v239_v56 = vmul.f32 0.01, %v221_v46  ;;  %281 = vst.msk [vmem:[%s504_s3] sm:$0xf] %vm280_vm0, %v313_v53  ;;  %285 = vst.msk [vmem:[%s504_s3 + $0x10] sm:$0xf] %vm280_vm0, %v317_v54  ;;  %v243_v59 = vsel %vm227_vm5, %v205_v45, %v235_v55 }
  0xff   :  { %v316_v60 = vpack.c.bf16 %v243_v59, %v243_v59  ;;  %vm225_vm7 = vcmp.gt.f32.partialorder %v197_v57, 0.0  ;;  %v233_v62 = vmul.f32 0.01, %v197_v57  ;;  %vm229_vm8 = vcmp.gt.f32.partialorder %v213_v58, 0.0 }
 0x100   :  { %v247_v61 = vsel %vm231_vm6, %v221_v46, %v239_v56  ;;  %v237_v0 = vmul.f32 0.01, %v213_v58 }
 0x101   :  { %v320_v63 = vpack.c.bf16 %v247_v61, %v247_v61  ;;  %284 = vst.msk [vmem:[%s504_s3 + $0xc] sm:$0xf] %vm280_vm0, %v316_v60  ;;  %v241_v1 = vsel %vm225_vm7, %v197_v57, %v233_v62 }
 0x102   :  { %v314_v2 = vpack.c.bf16 %v241_v1, %v241_v1  ;;  %v245_v3 = vsel %vm229_vm8, %v213_v58, %v237_v0 }
 0x103   :  { %288 = vst.msk [vmem:[%s504_s3 + $0x1c] sm:$0xf] %vm280_vm0, %v320_v63  ;;  %v318_v4 = vpack.c.bf16 %v245_v3, %v245_v3 }
 0x104   :  { %282 = vst.msk [vmem:[%s504_s3 + $0x4] sm:$0xf] %vm280_vm0, %v314_v2 }
 0x105   :  { %286 = vst.msk [vmem:[%s504_s3 + $0x14] sm:$0xf] %vm280_vm0, %v318_v4 }

// kernel: dcunet10_cross_attention.12
= control target key start
LH: loop header
LB: loop body
LE: loop exit
PB: predicated region body
PF: predicated region fallthrough
CT: control target
= control target key end

     0   :  { %v368_v1 = vmov 0   ;;  %vm79_vm0 = vcmask 523264   ;;  %vm280_vm3 = vcmask 257024   ;;  %s463_s1 = inlined_call_operand.vmem [shape: bf16[64,32], index: 1, kind: input, shape index: {}]   ;;  %s464_s0 = inlined_call_operand.vmem [shape: bf16[64,32], index: 0, kind: input, shape index: {}]   ;;  %s465_s3 = inlined_call_operand.vmem [shape: bf16[32,64], index: 3, kind: input, shape index: {}]   ;;  %s466_s2 = inlined_call_operand.vmem [shape: bf16[32,64], index: 2, kind: input, shape index: {}]   ;;  %s467_s4 = inlined_call_operand.vmem [shape: f32[32,1], index: 4, kind: input, shape index: {}]   ;;  %s468_s5 = inlined_call_operand.vmem [shape: bf16[32,32], index: 5, kind: output, shape index: {}]  }
   0x1   :  { %v356_v0 = vld [vmem:[%s463_s1] sm:$0xff]   ;;  %355 = vset.pattern.permute.xlu1 %v368_v1  ;;  %354 = vset.pattern.permute.xlu0 %v368_v1  ;;  %v358_v3 = vld [vmem:[%s463_s1 + $0x8] sm:$0xff]   ;;  %v360_v5 = vld [vmem:[%s463_s1 + $0x10] sm:$0xff]  }
   0x2   :  { %v357_v2 = vld [vmem:[%s464_s0] sm:$0xff]   ;;  %325 = vmatprep.subr.bf16.mxu1 %v356_v0  ;;  %v359_v4 = vld [vmem:[%s464_s0 + $0x8] sm:$0xff]   ;;  %v361_v6 = vld [vmem:[%s464_s0 + $0x10] sm:$0xff]  }
   0x3   :  { %337 = vmatprep.subr.bf16.mxu0 %v357_v2  ;;  %326 = vmatpush3.bf16.msra.mxu1 %v356_v0  ;;  %v362_v7 = vld [vmem:[%s463_s1 + $0x18] sm:$0xff]   ;;  %v364_v9 = vld [vmem:[%s465_s3] sm:$0xff]   ;;  %v226_v11 = vld [vmem:[%s467_s4 + $0x10] sm:$0xff] }
   0x4   :  { %338 = vmatpush3.bf16.msra.mxu0 %v357_v2  ;;  %327 = vmatprep.subr.bf16.mxu1 %v358_v3  ;;  %v363_v8 = vld [vmem:[%s464_s0 + $0x18] sm:$0xff]   ;;  %v365_v10 = vld [vmem:[%s466_s2] sm:$0xff]   ;;  %v366_v13 = vld [vmem:[%s465_s3 + $0x8] sm:$0xff]  }
   0x5   :  { %339 = vmatprep.subr.bf16.mxu0 %v359_v4  ;;  %333 = vmatprep.mubr.msk.bf16.mxu1 %vm79_vm0, %v364_v9  ;;  %v224_v12 = vld [vmem:[%s467_s4] sm:$0xff]  ;;  %v227_v14 = vld [vmem:[%s467_s4 + $0x18] sm:$0xff]  ;;  %v367_v15 = vld [vmem:[%s466_s2 + $0x8] sm:$0xff]  }
   0x6   :  { %345 = vmatprep.mubr.msk.bf16.mxu0 %vm79_vm0, %v365_v10  ;;  %240 = vperm.xlu1 %355, %v226_v11   ;;  %v225_v16 = vld [vmem:[%s467_s4 + $0x8] sm:$0xff] }
   0x7   :  { %328 = vmatpush3.bf16.msra.mxu1 %v358_v3  ;;  %230 = vperm.xlu0 %354, %v224_v12  }
   0x8   :  { %340 = vmatpush3.bf16.msra.mxu0 %v359_v4  ;;  %329 = vmatprep.subr.bf16.mxu1 %v360_v5 }
   0x9   :  { %341 = vmatprep.subr.bf16.mxu0 %v361_v6 }
   0xa   :  { %245 = vperm.xlu1 %355, %v227_v14  }
   0xb   :  { %330 = vmatpush3.bf16.msra.mxu1 %v360_v5  ;;  %235 = vperm.xlu0 %354, %v225_v16  }
   0xc   :  { %342 = vmatpush3.bf16.msra.mxu0 %v361_v6  ;;  %331 = vmatprep.subr.bf16.mxu1 %v362_v7 }
   0xd   :  { %343 = vmatprep.subr.bf16.mxu0 %v363_v8 }
   0xf   :  { %332 = vmatpush3.bf16.msra.mxu1 %v362_v7 }
  0x10   :  { %344 = vmatpush3.bf16.msra.mxu0 %v363_v8 }
  0x12   :  { %334 = vmatmul.mubr.msk.bf16.vlgmr.msra.gmra.mrb[0].mxu1 %vm79_vm0, %v366_v13 }
  0x13   :  { %346 = vmatmul.mubr.msk.bf16.vlgmr.msra.gmra.mrb[0].mxu0 %vm79_vm0, %v367_v15 }
  0x85   :  { %v241_v17 = vpop.permute.xlu1 %240 }
  0x86   :  { %v231_v18 = vpop.permute.xlu0 %230 }
  0x89   :  { %v246_v31 = vpop.permute.xlu1 %245 }
  0x8a   :  { %v236_v35 = vpop.permute.xlu0 %235 }
  0xe5   :  { %v335_v19 = vpop.f32.mrb[0].mxu1 }
  0xe6   :  { %v347_v20 = vpop.f32.mrb[0].mxu0  ;;  %v120_v21 = vpop.f32.mrb[1].mxu1 }
  0xe7   :  { %v218_v22 = vadd.f32 %v347_v20, %v335_v19  ;;  %v209_v23 = vpop.f32.mrb[1].mxu0  ;;  %v336_v24 = vpop.f32.mrb[2].mxu1 }
  0xe8   :  { %v210_v25 = vadd.f32 %v209_v23, %v120_v21  ;;  %v348_v26 = vpop.f32.mrb[2].mxu0  ;;  %v123_v27 = vpop.f32.mrb[3].mxu1 }
  0xe9   :  { %v250_v28 = vadd.f32 %v241_v17, %v218_v22  ;;  %v221_v29 = vadd.f32 %v348_v26, %v336_v24  ;;  %v212_v30 = vpop.f32.mrb[3].mxu0 }
  0xea   :  { %v248_v32 = vadd.f32 %v231_v18, %v210_v25  ;;  %v213_v33 = vadd.f32 %v212_v30, %v123_v27 }
  0xeb   :  { %vm254_vm1 = vcmp.gt.f32.partialorder %v250_v28, 0.0  ;;  %v258_v34 = vmul.f32 0.01, %v250_v28  ;;  %v251_v36 = vadd.f32 %v246_v31, %v221_v29 }
  0xec   :  { %vm252_vm2 = vcmp.gt.f32.partialorder %v248_v32, 0.0  ;;  %v256_v37 = vmul.f32 0.01, %v248_v32  ;;  %v249_v38 = vadd.f32 %v236_v35, %v213_v33 }
  0xed   :  { %v262_v39 = vsel %vm254_vm1, %v250_v28, %v258_v34  ;;  %vm255_vm4 = vcmp.gt.f32.partialorder %v251_v36, 0.0  ;;  %v259_v40 = vmul.f32 0.01, %v251_v36 }
  0xee   :  { %v311_v41 = vpack.c.bf16 %v262_v39, %v262_v39  ;;  %v260_v42 = vsel %vm252_vm2, %v248_v32, %v256_v37  ;;  %vm253_vm5 = vcmp.gt.f32.partialorder %v249_v38, 0.0  ;;  %v257_v43 = vmul.f32 0.01, %v249_v38 }
  0xef   :  { %v309_v44 = vpack.c.bf16 %v260_v42, %v260_v42  ;;  %v263_v45 = vsel %vm255_vm4, %v251_v36, %v259_v40 }
  0xf0   :  { %283 = vst.msk [vmem:[%s468_s5 + $0x8] sm:$0xf] %vm280_vm3, %v311_v41  ;;  %v312_v46 = vpack.c.bf16 %v263_v45, %v263_v45  ;;  %v261_v47 = vsel %vm253_vm5, %v249_v38, %v257_v43 }
  0xf1   :  { %281 = vst.msk [vmem:[%s468_s5] sm:$0xf] %vm280_vm3, %v309_v44  ;;  %v310_v48 = vpack.c.bf16 %v261_v47, %v261_v47 }
  0xf2   :  { %284 = vst.msk [vmem:[%s468_s5 + $0xc] sm:$0xf] %vm280_vm3, %v312_v46 }
  0xf3   :  { %282 = vst.msk [vmem:[%s468_s5 + $0x4] sm:$0xf] %vm280_vm3, %v310_v48 }

// kernel: dcunet10_cross_attention.13
= control target key start
LH: loop header
LB: loop body
LE: loop exit
PB: predicated region body
PF: predicated region fallthrough
CT: control target
= control target key end

     0   :  { %v245_v0 = vmov 0.0   ;;  %vm246_vm0 = vmmov 0   ;;  %v247_v4 = vmov 0   ;;  %vm46_vm1 = vcmask 261120   ;;  %s313_s1 = inlined_call_operand.vmem [shape: bf16[32,128], index: 1, kind: input, shape index: {}]   ;;  %s314_s0 = inlined_call_operand.vmem [shape: bf16[32,128], index: 0, kind: input, shape index: {}]   ;;  %s315_s4 = inlined_call_operand.vmem [shape: f32[8,1], index: 4, kind: input, shape index: {}]   ;;  %s316_s3 = inlined_call_operand.vmem [shape: bf16[8,32], index: 3, kind: input, shape index: {}]   ;;  %s317_s2 = inlined_call_operand.vmem [shape: bf16[8,32], index: 2, kind: input, shape index: {}]   ;;  %s318_s5 = inlined_call_operand.vmem [shape: f32[8,128], index: 5, kind: input, shape index: {}]   ;;  %s319_s6 = inlined_call_operand.vmem [shape: f32[8,128], index: 6, kind: output, shape index: {}]  }
   0x1   :  { %215 = vmatprep.subr.bf16.mxu0 %v245_v0  ;;  %223 = vmatprep.subr.bf16.mxu1 %v245_v0  ;;  %v235_v1 = vld [vmem:[%s313_s1] sm:$0xff]   ;;  %v237_v3 = vld [vmem:[%s313_s1 + $0x8] sm:$0xff]   ;;  %vm196_vm4 = vcmask 1043456  }
   0x2   :  { %v236_v2 = vld [vmem:[%s314_s0] sm:$0xff]   ;;  %219 = vmatprep.mubr.msk.bf16.mxu0 %vm246_vm0, %v245_v0  ;;  %227 = vmatprep.mubr.msk.bf16.mxu1 %vm246_vm0, %v245_v0  ;;  %v238_v5 = vld [vmem:[%s314_s0 + $0x8] sm:$0xff]  }
   0x3   :  { %216 = vmatpush3.bf16.msra.mxu0 %v235_v1  ;;  %234 = vset.pattern.permute.xlu0 %v247_v4  ;;  %v145_v6 = vld [vmem:[%s315_s4] sm:$0xff] }
   0x4   :  { %224 = vmatpush3.bf16.msra.mxu1 %v236_v2  ;;  %217 = vmatprep.subr.bf16.mxu0 %v245_v0  ;;  %v29_v7 = vld [vmem:[%s316_s3] sm:$0xf]  ;;  %v153_v32 = vld [vmem:[%s318_s5 + $0x4] sm:$0xf] }
   0x5   :  { %225 = vmatprep.subr.bf16.mxu1 %v245_v0  ;;  %148 = vperm.xlu0 %234, %v145_v6   ;;  %v24_v8 = vld [vmem:[%s317_s2] sm:$0xf]  ;;  %v177_v34 = vrot.slane %v153_v32, 4 }
   0x6   :  { %v152_v31 = vld [vmem:[%s318_s5] sm:$0xf] }
   0x7   :  { %218 = vmatpush3.bf16.msra.mxu0 %v237_v3  ;;  %v186_v35 = vrot.slane %v152_v31, 4 }
   0x8   :  { %226 = vmatpush3.bf16.msra.mxu1 %v238_v5 }
   0xa   :  { %220 = vmatmul.mubr.msk.bf16.vlgmr.msra.gmra.mrb[0].mxu0 %vm46_vm1, %v29_v7 }
   0xb   :  { %228 = vmatmul.mubr.msk.bf16.vlgmr.msra.gmra.mrb[0].mxu1 %vm46_vm1, %v24_v8 }
  0x84   :  { %v149_v10 = vpop.permute.xlu0 %148 }
  0xdd   :  { %v84_v9 = vpop.f32.mrb[0].mxu0 }
  0xde   :  { %v139_v11 = vpop.f32.mrb[0].mxu1  ;;  %v221_v12 = vpop.f32.mrb[1].mxu0 }
  0xdf   :  { %v140_v13 = vadd.f32 %v139_v11, %v84_v9  ;;  %v229_v14 = vpop.f32.mrb[1].mxu1  ;;  %v87_v15 = vpop.f32.mrb[2].mxu0 }
  0xe0   :  { %v142_v16 = vpop.f32.mrb[2].mxu1  ;;  %v222_v17 = vpop.f32.mrb[3].mxu0 }
  0xe1   :  { %v151_v18 = vadd.f32 %v149_v10, %v140_v13  ;;  %v230_v19 = vpop.f32.mrb[3].mxu1 }
  0xe3   :  { %v154_v20 = vmul.f32 %v151_v18, %v151_v18 }
  0xe5   :  { %v156_v21 = vrot.slane %v154_v20, 4 }
  0xe7   :  { %v158_v22 = vadd.f32 %v156_v21, %v154_v20 }
  0xe9   :  { %239 = vrsqrt.f32 %v158_v22  ;;  %v167_v24 = vadd.f32 1e-12, %v158_v22  ;;  %vm161_vm2 = vcmp.eq.f32.partialorder %v158_v22, inf  ;;  %v164_v26 = vand.u32 2147483648, %v158_v22 }
  0xea   :  { %vm163_vm3 = vcmp.eq.f32.partialorder %v158_v22, 0.0 }
  0xeb   :  { %241 = vrsqrt.f32 %v167_v24 }
  0xf3   :  { %v240_v23 = vpop.eup %239 }
  0xf4   :  { %v160_v25 = vmul.f32 %v240_v23, %v158_v22 }
  0xf5   :  { %v242_v29 = vpop.eup %241 }
  0xf6   :  { %v162_v27 = vsel %vm161_vm2, %v158_v22, %v160_v25 }
  0xf7   :  { %v165_v28 = vsel %vm163_vm3, %v164_v26, %v162_v27 }
  0xf8   :  { %243 = vtanh.f32 %v165_v28 }
 0x102   :  { %v244_v30 = vpop.eup %243 }
 0x103   :  { %v169_v33 = vmul.f32 %v244_v30, %v242_v29 }
 0x105   :  { %v172_v36 = vrot.slane %v169_v33, 4  ;;  %v170_v37 = vmul.f32 %v169_v33, %v151_v18 }
 0x107   :  { %v174_v38 = vmul.f32 %v172_v36, %v151_v18  ;;  %v184_v42 = vmul.f32 %v170_v37, %v153_v32  ;;  %v175_v44 = vmul.f32 %v170_v37, %v152_v31 }
 0x109   :  { %v179_v39 = vmul.f32 %v177_v34, %v174_v38  ;;  %v188_v40 = vmul.f32 %v186_v35, %v174_v38 }
 0x10b   :  { %v181_v41 = vrot.slane %v179_v39, 4  ;;  %v190_v43 = vrot.slane %v188_v40, 4 }
 0x10d   :  { %v192_v45 = vadd.f32 %v190_v43, %v184_v42  ;;  %v183_v46 = vsub.f32 %v175_v44, %v181_v41 }
 0x10f   :  { %v194_v47 = vrot.slane %v192_v45, 4 }
 0x111   :  { %v197_v48 = vsel %vm196_vm4, %v183_v46, %v194_v47 }
 0x112   :  { %198 = vst [vmem:[%s319_s6] sm:$0xff] %v197_v48 }

</bundles_post_ra>
